<compile_context>
chip_gen: v6e
topology: v6e:2x2x1
jax: 0.10.0
libtpu: 0.0.40
codegen_flags: <defaults>
</compile_context>

<pallas_src>
import functools

import jax
import jax.numpy as jnp
from jax.experimental import pallas as pl
from jax.experimental.pallas import tpu as pltpu


def _rpn_head_kernel(x_ref, w1_ref, b1_ref, wh_ref, bh_ref, out_ref, *, rb, W):
    """One (image, row-band) tile per grid step.

    x_ref   : (1, H+2, W+2, Cin) bf16  zero-padded NHWC image (whole image;
                                       re-DMA'd only when the image index n
                                       changes, since its block index is
                                       constant along the row-band axis)
    w1_ref  : (9, Cin, Hid)      bf16  conv3x3 weight, one (Cin, Hid) slab per
                                       tap (t = dy*3 + dx)
    b1_ref  : (1, Hid)           f32
    wh_ref  : (Hid, HP)          bf16  fused [conf | reg | 0-pad] 1x1 weight
    bh_ref  : (1, HP)            f32   fused [conf | reg | 0-pad] bias
    out_ref : (1, rb*W, HP)      bf16  lane-dense (128-padded) head output
    """
    rows = rb * W
    cin = x_ref.shape[3]
    hid = w1_ref.shape[2]
    row0 = pl.program_id(1) * rb

    # Haloed row band for this grid step: rows [row0, row0 + rb + 2) of the
    # padded image (one dynamic-start load per step).
    band = x_ref[0, pl.ds(row0, rb + 2), :, :]          # (rb+2, W+2, Cin)

    # conv3x3(pad=1) == 9 accumulating (rows, Cin) @ (Cin, Hid) MXU matmuls.
    acc = jnp.zeros((rows, hid), jnp.float32)
    for t in range(9):
        dy, dx = divmod(t, 3)
        tap = band[dy:dy + rb, dx:dx + W, :]            # (rb, W, Cin)
        acc = acc + jnp.dot(tap.reshape(rows, cin), w1_ref[t],
                            preferred_element_type=jnp.float32)

    # dropout is identity in eval mode; bias add + ReLU stay in f32.
    hidden = jnp.maximum(acc + b1_ref[...], 0.0)

    # fused conf/reg 1x1 heads == one matmul over the channel axis.
    heads = jnp.dot(hidden.astype(wh_ref.dtype), wh_ref[...],
                    preferred_element_type=jnp.float32) + bh_ref[...]
    out_ref[0] = heads.astype(out_ref.dtype)


def _pick_row_band(n, h, w, cin, hid, heads_pad,
                   budget_bytes=28 * 1024 * 1024):
    """Largest row band whose per-step working set fits the VMEM budget.

    Prefers bands that yield >= 2 total grid steps (so a 2-TC chip can split
    the 'parallel' grid) and keeps the output block (8,128)-legal.
    """
    divisors = [d for d in range(h, 0, -1) if h % d == 0]
    fallback = None
    for rb in divisors:
        rows = rb * w
        if rb != h and rows % 8:                       # (8,128) legality
            continue
        img = (h + 2) * (w + 2) * cin * 2 * 2          # haloed image, 2 bufs
        out = rows * heads_pad * 2 * 2                 # bf16 out block, 2 bufs
        wgt = (9 * cin * hid + hid * heads_pad) * 2    # single-buffered wts
        accb = rows * hid * 4                          # f32 conv accumulator
        tap = rows * cin * 2 * 2                       # tap-slice temporaries
        if img + out + wgt + accb + tap > budget_bytes:
            continue
        if fallback is None:
            fallback = rb
        if n * (h // rb) >= 2:
            return rb
    return fallback if fallback is not None else 1


def proposal_module_forward(feature_map_nchw, params, *, return_nhwc=False):
    """Eval-mode forward of ProposalModule.

    feature_map_nchw: (N, Cin, H, W) float32
    returns (conf_scores_pred [N, A, H, W], reg_offsets_pred [N, 4A, H, W])
    (or NHWC-style [N, H, W, C] tensors if return_nhwc=True, which skips the
    two wrapper-side transposes).
    """
    conv1_w = params["conv1_w"]            # (Hid, Cin, 3, 3)  PyTorch OIHW
    conv1_b = params["conv1_b"]            # (Hid,)
    conf_w = params["conf_w"]              # (A, Hid, 1, 1)
    conf_b = params["conf_b"]              # (A,)
    reg_w = params["reg_w"]                # (4A, Hid, 1, 1)
    reg_b = params["reg_b"]                # (4A,)

    N, Cin, H, W = feature_map_nchw.shape
    Hid = conv1_w.shape[0]
    A = conf_w.shape[0]
    heads_out = 5 * A
    heads_pad = max(128, pl.cdiv(heads_out, 128) * 128)   # lane-dense slab

    # ---- fold weights into the fused-kernel layout (bf16 matmul operands) --
    # (Hid,Cin,3,3) -> (3,3,Cin,Hid) -> (9,Cin,Hid); tap index t = dy*3 + dx.
    w1 = jnp.transpose(conv1_w, (2, 3, 1, 0)).reshape(9, Cin, Hid)
    w1 = w1.astype(jnp.bfloat16)
    b1 = conv1_b.reshape(1, Hid).astype(jnp.float32)
    wh = jnp.concatenate([conf_w.reshape(A, Hid).T,
                          reg_w.reshape(4 * A, Hid).T], axis=1)   # (Hid, 5A)
    wh = jnp.pad(wh, ((0, 0), (0, heads_pad - heads_out))).astype(jnp.bfloat16)
    bh = jnp.concatenate([conf_b, reg_b])
    bh = jnp.pad(bh, (0, heads_pad - heads_out)).reshape(1, heads_pad)
    bh = bh.astype(jnp.float32)

    # ---- only wrapper-side data prep: +1 halo pad of the NHWC feature map --
    x = jnp.transpose(feature_map_nchw, (0, 2, 3, 1))             # NHWC
    x_pad = jnp.pad(x, ((0, 0), (1, 1), (1, 1), (0, 0))).astype(jnp.bfloat16)

    rb = _pick_row_band(N, H, W, Cin, Hid, heads_pad)
    n_bands = H // rb

    def weight_spec(shape):
        # grid-invariant operand: constant index_map + single buffer
        return pl.BlockSpec(shape, lambda n, r: (0,) * len(shape),
                            pipeline_mode=pl.Buffered(1))

    kernel = functools.partial(_rpn_head_kernel, rb=rb, W=W)
    out = pl.pallas_call(
        kernel,
        out_shape=jax.ShapeDtypeStruct((N, H * W, heads_pad), jnp.bfloat16),
        grid_spec=pltpu.PrefetchScalarGridSpec(
            num_scalar_prefetch=0,
            grid=(N, n_bands),
            in_specs=[
                # whole padded image per n (re-fetched only when n changes)
                pl.BlockSpec((1, H + 2, W + 2, Cin),
                             lambda n, r: (n, 0, 0, 0)),
                weight_spec((9, Cin, Hid)),
                weight_spec((1, Hid)),
                weight_spec((Hid, heads_pad)),
                weight_spec((1, heads_pad)),
            ],
            out_specs=pl.BlockSpec((1, rb * W, heads_pad),
                                   lambda n, r: (n, r, 0)),
        ),
        compiler_params=pltpu.CompilerParams(
            dimension_semantics=("parallel", "parallel"),
            vmem_limit_bytes=48 * 1024 * 1024),
    )(x_pad, w1, b1, wh, bh)

    # ---- split fused heads, drop the zero-padded lanes ----------------------
    out = out.reshape(N, H, W, heads_pad)[..., :heads_out].astype(jnp.float32)
    conf = out[..., :A]                                  # (N, H, W, A)
    reg = out[..., A:]                                   # (N, H, W, 4A)
    if return_nhwc:
        return conf, reg
    # PyTorch NCHW convention for the module's outputs.
    return (jnp.transpose(conf, (0, 3, 1, 2)),
            jnp.transpose(reg, (0, 3, 1, 2)))


def init_params(key, in_features, hidden_dim, n_anchors):
    """Deterministic synthetic parameters in PyTorch nn.Conv2d layouts."""
    k1, k2, k3, k4, k5, k6 = jax.random.split(key, 6)
    s = 0.05
    return {
        "conv1_w": s * jax.random.normal(
            k1, (hidden_dim, in_features, 3, 3), jnp.float32),
        "conv1_b": s * jax.random.normal(k2, (hidden_dim,), jnp.float32),
        "conf_w": s * jax.random.normal(
            k3, (n_anchors, hidden_dim, 1, 1), jnp.float32),
        "conf_b": s * jax.random.normal(k4, (n_anchors,), jnp.float32),
        "reg_w": s * jax.random.normal(
            k5, (4 * n_anchors, hidden_dim, 1, 1), jnp.float32),
        "reg_b": s * jax.random.normal(k6, (4 * n_anchors,), jnp.float32),
    }


def _reference_forward(x_nchw, params):
    """Pure-XLA f32 reference (same math as the PyTorch module, eval mode)."""
    dn = ("NCHW", "OIHW", "NCHW")
    out = jax.lax.conv_general_dilated(
        x_nchw, params["conv1_w"], (1, 1), ((1, 1), (1, 1)),
        dimension_numbers=dn)
    out = jnp.maximum(out + params["conv1_b"][None, :, None, None], 0.0)
    conf = jax.lax.conv_general_dilated(
        out, params["conf_w"], (1, 1), ((0, 0), (0, 0)),
        dimension_numbers=dn) + params["conf_b"][None, :, None, None]
    reg = jax.lax.conv_general_dilated(
        out, params["reg_w"], (1, 1), ((0, 0), (0, 0)),
        dimension_numbers=dn) + params["reg_b"][None, :, None, None]
    return conf, reg


# TODO(synk): train-mode branch (flatten-gather of conf/offsets at pos/neg
# anchor indices and generate_proposals box math) is data-dependent gather
# glue around the same conv outputs; not implemented here (eval mode only).


if __name__ == "__main__":
    N, Cin, H, W = 2, 4, 16, 16
    hidden_dim, n_anchors = 32, 9

    key = jax.random.PRNGKey(0)
    kx, kp = jax.random.split(key)
    feature_map = jax.random.normal(kx, (N, Cin, H, W), jnp.float32)
    params = init_params(kp, Cin, hidden_dim, n_anchors)

    conf, reg = jax.jit(proposal_module_forward)(feature_map, params)
    jax.block_until_ready((conf, reg))

    assert conf.shape == (N, n_anchors, H, W)
    assert reg.shape == (N, 4 * n_anchors, H, W)

    # Sanity check against an f32 XLA reference (bf16 matmul operands / bf16
    # output slab with f32 accumulation => loose tolerance is plenty).
    ref_conf, ref_reg = _reference_forward(feature_map, params)
    assert float(jnp.max(jnp.abs(conf - ref_conf))) < 5e-2
    assert float(jnp.max(jnp.abs(reg - ref_reg))) < 5e-2

    print("KERNEL_OK")
</pallas_src>

<mosaic_0001>
module attributes {stable_mosaic.version = 11 : i64} {
  func.func @_rpn_head_kernel(%arg0: i32, %arg1: i32, %arg2: memref<1x18x18x4xbf16, #tpu.memory_space<vmem>>, %arg3: memref<9x4x32xbf16, #tpu.memory_space<vmem>>, %arg4: memref<1x32xf32, #tpu.memory_space<vmem>>, %arg5: memref<32x128xbf16, #tpu.memory_space<vmem>>, %arg6: memref<1x128xf32, #tpu.memory_space<vmem>>, %arg7: memref<1x256x128xbf16, #tpu.memory_space<vmem>>) attributes {dimension_semantics = [#tpu.dimension_semantics<parallel>, #tpu.dimension_semantics<parallel>], iteration_bounds = array<i64: 2, 1>, scalar_prefetch = 0 : i64, scratch_operands = 0 : i64, tpu.core_type = #tpu.core_type<tc>, window_params = [{transform_indices = @transform_0, window_bounds = array<i64: 1, 18, 18, 4>}, {pipeline_mode = #tpu.pipeline_mode<synchronous>, transform_indices = @transform_1, window_bounds = array<i64: 9, 4, 32>}, {pipeline_mode = #tpu.pipeline_mode<synchronous>, transform_indices = @transform_2, window_bounds = array<i64: 1, 32>}, {pipeline_mode = #tpu.pipeline_mode<synchronous>, transform_indices = @transform_3, window_bounds = array<i64: 32, 128>}, {pipeline_mode = #tpu.pipeline_mode<synchronous>, transform_indices = @transform_4, window_bounds = array<i64: 1, 128>}, {transform_indices = @transform_5, window_bounds = array<i64: 1, 256, 128>}]} {
    %c16_i32 = arith.constant 16 : i32
    %0 = arith.muli %arg1, %c16_i32 : i32
    %c0 = arith.constant 0 : index
    %1 = arith.index_cast %0 : i32 to index
    %c0_0 = arith.constant 0 : index
    %c0_1 = arith.constant 0 : index
    %2 = vector.load %arg2[%c0, %1, %c0_0, %c0_1] : memref<1x18x18x4xbf16, #tpu.memory_space<vmem>>, vector<1x18x18x4xbf16>
    %3 = vector.shape_cast %2 : vector<1x18x18x4xbf16> to vector<18x18x4xbf16>
    %cst = arith.constant 0.000000e+00 : f32
    %4 = vector.broadcast %cst : f32 to vector<256x32xf32>
    %5 = vector.extract_strided_slice %3 {offsets = [0, 0, 0], sizes = [16, 16, 4], strides = [1, 1, 1]} : vector<18x18x4xbf16> to vector<16x16x4xbf16>
    %6 = vector.shape_cast %5 : vector<16x16x4xbf16> to vector<256x4xbf16>
    %c0_2 = arith.constant 0 : index
    %c0_3 = arith.constant 0 : index
    %c0_4 = arith.constant 0 : index
    %7 = vector.load %arg3[%c0_2, %c0_3, %c0_4] : memref<9x4x32xbf16, #tpu.memory_space<vmem>>, vector<1x4x32xbf16>
    %8 = vector.shape_cast %7 : vector<1x4x32xbf16> to vector<4x32xbf16>
    %cst_5 = arith.constant dense<0.000000e+00> : vector<256x32xf32>
    %9 = tpu.matmul %6, %8, %cst_5 {dimension_numbers = #tpu.dot_dimension_numbers<[1], [0], [0], [1], [0, 0, 1, 1], [], []>} : vector<256x4xbf16>, vector<4x32xbf16>, vector<256x32xf32> -> vector<256x32xf32>
    %10 = arith.addf %4, %9 : vector<256x32xf32>
    %11 = vector.extract_strided_slice %3 {offsets = [0, 1, 0], sizes = [16, 16, 4], strides = [1, 1, 1]} : vector<18x18x4xbf16> to vector<16x16x4xbf16>
    %12 = vector.shape_cast %11 : vector<16x16x4xbf16> to vector<256x4xbf16>
    %c1 = arith.constant 1 : index
    %c0_6 = arith.constant 0 : index
    %c0_7 = arith.constant 0 : index
    %13 = vector.load %arg3[%c1, %c0_6, %c0_7] : memref<9x4x32xbf16, #tpu.memory_space<vmem>>, vector<1x4x32xbf16>
    %14 = vector.shape_cast %13 : vector<1x4x32xbf16> to vector<4x32xbf16>
    %cst_8 = arith.constant dense<0.000000e+00> : vector<256x32xf32>
    %15 = tpu.matmul %12, %14, %cst_8 {dimension_numbers = #tpu.dot_dimension_numbers<[1], [0], [0], [1], [0, 0, 1, 1], [], []>} : vector<256x4xbf16>, vector<4x32xbf16>, vector<256x32xf32> -> vector<256x32xf32>
    %16 = arith.addf %10, %15 : vector<256x32xf32>
    %17 = vector.extract_strided_slice %3 {offsets = [0, 2, 0], sizes = [16, 16, 4], strides = [1, 1, 1]} : vector<18x18x4xbf16> to vector<16x16x4xbf16>
    %18 = vector.shape_cast %17 : vector<16x16x4xbf16> to vector<256x4xbf16>
    %c2 = arith.constant 2 : index
    %c0_9 = arith.constant 0 : index
    %c0_10 = arith.constant 0 : index
    %19 = vector.load %arg3[%c2, %c0_9, %c0_10] : memref<9x4x32xbf16, #tpu.memory_space<vmem>>, vector<1x4x32xbf16>
    %20 = vector.shape_cast %19 : vector<1x4x32xbf16> to vector<4x32xbf16>
    %cst_11 = arith.constant dense<0.000000e+00> : vector<256x32xf32>
    %21 = tpu.matmul %18, %20, %cst_11 {dimension_numbers = #tpu.dot_dimension_numbers<[1], [0], [0], [1], [0, 0, 1, 1], [], []>} : vector<256x4xbf16>, vector<4x32xbf16>, vector<256x32xf32> -> vector<256x32xf32>
    %22 = arith.addf %16, %21 : vector<256x32xf32>
    %23 = vector.extract_strided_slice %3 {offsets = [1, 0, 0], sizes = [16, 16, 4], strides = [1, 1, 1]} : vector<18x18x4xbf16> to vector<16x16x4xbf16>
    %24 = vector.shape_cast %23 : vector<16x16x4xbf16> to vector<256x4xbf16>
    %c3 = arith.constant 3 : index
    %c0_12 = arith.constant 0 : index
    %c0_13 = arith.constant 0 : index
    %25 = vector.load %arg3[%c3, %c0_12, %c0_13] : memref<9x4x32xbf16, #tpu.memory_space<vmem>>, vector<1x4x32xbf16>
    %26 = vector.shape_cast %25 : vector<1x4x32xbf16> to vector<4x32xbf16>
    %cst_14 = arith.constant dense<0.000000e+00> : vector<256x32xf32>
    %27 = tpu.matmul %24, %26, %cst_14 {dimension_numbers = #tpu.dot_dimension_numbers<[1], [0], [0], [1], [0, 0, 1, 1], [], []>} : vector<256x4xbf16>, vector<4x32xbf16>, vector<256x32xf32> -> vector<256x32xf32>
    %28 = arith.addf %22, %27 : vector<256x32xf32>
    %29 = vector.extract_strided_slice %3 {offsets = [1, 1, 0], sizes = [16, 16, 4], strides = [1, 1, 1]} : vector<18x18x4xbf16> to vector<16x16x4xbf16>
    %30 = vector.shape_cast %29 : vector<16x16x4xbf16> to vector<256x4xbf16>
    %c4 = arith.constant 4 : index
    %c0_15 = arith.constant 0 : index
    %c0_16 = arith.constant 0 : index
    %31 = vector.load %arg3[%c4, %c0_15, %c0_16] : memref<9x4x32xbf16, #tpu.memory_space<vmem>>, vector<1x4x32xbf16>
    %32 = vector.shape_cast %31 : vector<1x4x32xbf16> to vector<4x32xbf16>
    %cst_17 = arith.constant dense<0.000000e+00> : vector<256x32xf32>
    %33 = tpu.matmul %30, %32, %cst_17 {dimension_numbers = #tpu.dot_dimension_numbers<[1], [0], [0], [1], [0, 0, 1, 1], [], []>} : vector<256x4xbf16>, vector<4x32xbf16>, vector<256x32xf32> -> vector<256x32xf32>
    %34 = arith.addf %28, %33 : vector<256x32xf32>
    %35 = vector.extract_strided_slice %3 {offsets = [1, 2, 0], sizes = [16, 16, 4], strides = [1, 1, 1]} : vector<18x18x4xbf16> to vector<16x16x4xbf16>
    %36 = vector.shape_cast %35 : vector<16x16x4xbf16> to vector<256x4xbf16>
    %c5 = arith.constant 5 : index
    %c0_18 = arith.constant 0 : index
    %c0_19 = arith.constant 0 : index
    %37 = vector.load %arg3[%c5, %c0_18, %c0_19] : memref<9x4x32xbf16, #tpu.memory_space<vmem>>, vector<1x4x32xbf16>
    %38 = vector.shape_cast %37 : vector<1x4x32xbf16> to vector<4x32xbf16>
    %cst_20 = arith.constant dense<0.000000e+00> : vector<256x32xf32>
    %39 = tpu.matmul %36, %38, %cst_20 {dimension_numbers = #tpu.dot_dimension_numbers<[1], [0], [0], [1], [0, 0, 1, 1], [], []>} : vector<256x4xbf16>, vector<4x32xbf16>, vector<256x32xf32> -> vector<256x32xf32>
    %40 = arith.addf %34, %39 : vector<256x32xf32>
    %41 = vector.extract_strided_slice %3 {offsets = [2, 0, 0], sizes = [16, 16, 4], strides = [1, 1, 1]} : vector<18x18x4xbf16> to vector<16x16x4xbf16>
    %42 = vector.shape_cast %41 : vector<16x16x4xbf16> to vector<256x4xbf16>
    %c6 = arith.constant 6 : index
    %c0_21 = arith.constant 0 : index
    %c0_22 = arith.constant 0 : index
    %43 = vector.load %arg3[%c6, %c0_21, %c0_22] : memref<9x4x32xbf16, #tpu.memory_space<vmem>>, vector<1x4x32xbf16>
    %44 = vector.shape_cast %43 : vector<1x4x32xbf16> to vector<4x32xbf16>
    %cst_23 = arith.constant dense<0.000000e+00> : vector<256x32xf32>
    %45 = tpu.matmul %42, %44, %cst_23 {dimension_numbers = #tpu.dot_dimension_numbers<[1], [0], [0], [1], [0, 0, 1, 1], [], []>} : vector<256x4xbf16>, vector<4x32xbf16>, vector<256x32xf32> -> vector<256x32xf32>
    %46 = arith.addf %40, %45 : vector<256x32xf32>
    %47 = vector.extract_strided_slice %3 {offsets = [2, 1, 0], sizes = [16, 16, 4], strides = [1, 1, 1]} : vector<18x18x4xbf16> to vector<16x16x4xbf16>
    %48 = vector.shape_cast %47 : vector<16x16x4xbf16> to vector<256x4xbf16>
    %c7 = arith.constant 7 : index
    %c0_24 = arith.constant 0 : index
    %c0_25 = arith.constant 0 : index
    %49 = vector.load %arg3[%c7, %c0_24, %c0_25] : memref<9x4x32xbf16, #tpu.memory_space<vmem>>, vector<1x4x32xbf16>
    %50 = vector.shape_cast %49 : vector<1x4x32xbf16> to vector<4x32xbf16>
    %cst_26 = arith.constant dense<0.000000e+00> : vector<256x32xf32>
    %51 = tpu.matmul %48, %50, %cst_26 {dimension_numbers = #tpu.dot_dimension_numbers<[1], [0], [0], [1], [0, 0, 1, 1], [], []>} : vector<256x4xbf16>, vector<4x32xbf16>, vector<256x32xf32> -> vector<256x32xf32>
    %52 = arith.addf %46, %51 : vector<256x32xf32>
    %53 = vector.extract_strided_slice %3 {offsets = [2, 2, 0], sizes = [16, 16, 4], strides = [1, 1, 1]} : vector<18x18x4xbf16> to vector<16x16x4xbf16>
    %54 = vector.shape_cast %53 : vector<16x16x4xbf16> to vector<256x4xbf16>
    %c8 = arith.constant 8 : index
    %c0_27 = arith.constant 0 : index
    %c0_28 = arith.constant 0 : index
    %55 = vector.load %arg3[%c8, %c0_27, %c0_28] : memref<9x4x32xbf16, #tpu.memory_space<vmem>>, vector<1x4x32xbf16>
    %56 = vector.shape_cast %55 : vector<1x4x32xbf16> to vector<4x32xbf16>
    %cst_29 = arith.constant dense<0.000000e+00> : vector<256x32xf32>
    %57 = tpu.matmul %54, %56, %cst_29 {dimension_numbers = #tpu.dot_dimension_numbers<[1], [0], [0], [1], [0, 0, 1, 1], [], []>} : vector<256x4xbf16>, vector<4x32xbf16>, vector<256x32xf32> -> vector<256x32xf32>
    %58 = arith.addf %52, %57 : vector<256x32xf32>
    %c0_30 = arith.constant 0 : index
    %c0_31 = arith.constant 0 : index
    %59 = vector.load %arg4[%c0_30, %c0_31] : memref<1x32xf32, #tpu.memory_space<vmem>>, vector<1x32xf32>
    %60 = vector.broadcast %59 : vector<1x32xf32> to vector<256x32xf32>
    %61 = arith.addf %58, %60 : vector<256x32xf32>
    %cst_32 = arith.constant 0.000000e+00 : f32
    %62 = vector.broadcast %cst_32 : f32 to vector<256x32xf32>
    %63 = arith.maximumf %61, %62 : vector<256x32xf32>
    %64 = arith.truncf %63 : vector<256x32xf32> to vector<256x32xbf16>
    %c0_33 = arith.constant 0 : index
    %c0_34 = arith.constant 0 : index
    %65 = vector.load %arg5[%c0_33, %c0_34] : memref<32x128xbf16, #tpu.memory_space<vmem>>, vector<32x128xbf16>
    %cst_35 = arith.constant dense<0.000000e+00> : vector<256x128xf32>
    %66 = tpu.matmul %64, %65, %cst_35 {dimension_numbers = #tpu.dot_dimension_numbers<[1], [0], [0], [1], [0, 0, 1, 1], [], []>} : vector<256x32xbf16>, vector<32x128xbf16>, vector<256x128xf32> -> vector<256x128xf32>
    %c0_36 = arith.constant 0 : index
    %c0_37 = arith.constant 0 : index
    %67 = vector.load %arg6[%c0_36, %c0_37] : memref<1x128xf32, #tpu.memory_space<vmem>>, vector<1x128xf32>
    %68 = vector.broadcast %67 : vector<1x128xf32> to vector<256x128xf32>
    %69 = arith.addf %66, %68 : vector<256x128xf32>
    %70 = arith.truncf %69 : vector<256x128xf32> to vector<256x128xbf16>
    %c0_38 = arith.constant 0 : index
    %c0_39 = arith.constant 0 : index
    %c0_40 = arith.constant 0 : index
    %71 = vector.load %arg7[%c0_38, %c0_39, %c0_40] : memref<1x256x128xbf16, #tpu.memory_space<vmem>>, vector<1x256x128xbf16>
    %72 = vector.shape_cast %71 : vector<1x256x128xbf16> to vector<256x128xbf16>
    %73 = vector.shape_cast %70 : vector<256x128xbf16> to vector<1x256x128xbf16>
    tpu.vector_store %arg7[%c0_38, %c0_39, %c0_40], %73 {strides = array<i32>} : memref<1x256x128xbf16, #tpu.memory_space<vmem>>, vector<1x256x128xbf16>,
    return
  }
  func.func @transform_0(%arg0: i32, %arg1: i32) -> (i32, i32, i32, i32) {
    %c0_i32 = arith.constant 0 : i32
    %c0_i32_0 = arith.constant 0 : i32
    %c0_i32_1 = arith.constant 0 : i32
    %c0_i32_2 = arith.constant 0 : i32
    return %arg0, %c0_i32, %c0_i32_0, %c0_i32_1 : i32, i32, i32, i32
  }
  func.func @transform_1(%arg0: i32, %arg1: i32) -> (i32, i32, i32) {
    %c0_i32 = arith.constant 0 : i32
    %c0_i32_0 = arith.constant 0 : i32
    %c0_i32_1 = arith.constant 0 : i32
    %c0_i32_2 = arith.constant 0 : i32
    return %c0_i32, %c0_i32_0, %c0_i32_1 : i32, i32, i32
  }
  func.func @transform_2(%arg0: i32, %arg1: i32) -> (i32, i32) {
    %c0_i32 = arith.constant 0 : i32
    %c0_i32_0 = arith.constant 0 : i32
    %c0_i32_1 = arith.constant 0 : i32
    return %c0_i32, %c0_i32_0 : i32, i32
  }
  func.func @transform_3(%arg0: i32, %arg1: i32) -> (i32, i32) {
    %c0_i32 = arith.constant 0 : i32
    %c0_i32_0 = arith.constant 0 : i32
    %c0_i32_1 = arith.constant 0 : i32
    return %c0_i32, %c0_i32_0 : i32, i32
  }
  func.func @transform_4(%arg0: i32, %arg1: i32) -> (i32, i32) {
    %c0_i32 = arith.constant 0 : i32
    %c0_i32_0 = arith.constant 0 : i32
    %c0_i32_1 = arith.constant 0 : i32
    return %c0_i32, %c0_i32_0 : i32, i32
  }
  func.func @transform_5(%arg0: i32, %arg1: i32) -> (i32, i32, i32) {
    %c0_i32 = arith.constant 0 : i32
    %c0_i32_0 = arith.constant 0 : i32
    return %arg0, %arg1, %c0_i32 : i32, i32, i32
  }
}

</mosaic_0001>

<bundles_post_ra>
// kernel: proposal_module_forward.1
= control target key start
LH: loop header
LB: loop body
LE: loop exit
PB: predicated region body
PF: predicated region fallthrough
CT: control target
= control target key end

     0   :  { %s4566_s18 = smov 0   ;;  %s4568_s19 = smov 0   ;;  %s6179_s0 = inlined_call_operand.vmem [shape: bf16[2,18,18,4], index: 0, kind: input, shape index: {}]   ;;  %s6180_s1 = inlined_call_operand.vmem [shape: bf16[9,4,32], index: 1, kind: input, shape index: {}]   ;;  %s6181_s2 = inlined_call_operand.vmem [shape: f32[1,32], index: 2, kind: input, shape index: {}]   ;;  %s6182_s3 = inlined_call_operand.vmem [shape: bf16[32,128], index: 3, kind: input, shape index: {}]   ;;  %s6183_s4 = inlined_call_operand.vmem [shape: f32[1,128], index: 4, kind: input, shape index: {}]   ;;  %s6184_s5 = inlined_call_operand.vmem [shape: bf16[2,256,128], index: 5, kind: output, shape index: {}]  }
   0x1   :  { %s4570_s20 = smov 0  }
   0x2 LB: > { %s27_s21 = sadd.s32 1, %s4530_s19  ;;  %p3535_p0 = scmp.ge.s32.totalorder %s4534_s20, 1  ;;  %s4534_s20 = sphi %s4570_s20, %s15_s20   ;;  %s4530_s19 = sphi %s4568_s19, %s6380_s19   ;;  %s4526_s18 = sphi %s4566_s18, %s6379_s18  }
   0x3   : > { %p29_p1 = scmp.ge.s32.totalorder %s27_s21, 2  ;;  %p201_p2 = scmp.lt.s32.totalorder %s4534_s20, 3 }
   0x5   : > { %s6382_s21 = smov (%p29_p1, %s27_s21), 0  ;;  %p202_p3 = pnand %p3535_p0, %p201_p2 }
   0x7   : > { %205 = sbr.rel (%p202_p3) target bundleno = 765 (0x2fd), region = 40 }
   0xc   : > { %v3539_v0 = vld [vmem:[%s6180_s1 + $0x2] sm:$0x3]  ;;  %vm794_vm0 = vcmask 1041408   ;;  %v307_v1 = vld [vmem:[%s6180_s1] sm:$0x3]  ;;  %p233_p4 = scmp.lt.s32.totalorder %s4526_s18, 1 }
   0xd   : > { %4458 = vmatprep.subr.msk.bf16.mxu0 %vm794_vm0, %v3539_v0  ;;  %v796_v2 = vsel %vm794_vm0, %v3539_v0, 0  ;;  %4459 = vmatprep.subr.msk.bf16.mxu1 %vm794_vm0, %v307_v1  ;;  %v1088_v3 = vsel %vm794_vm0, %v307_v1, 0  ;;  %v3620_v4 = vld [vmem:[%s6180_s1 + $0x4] sm:$0x3]  ;;  %v3653_v5 = vld [vmem:[%s6180_s1 + $0x6] sm:$0x3] }
   0xe   : > { %4117 = vmatpush3.bf16.msra.mxu0 %v796_v2  ;;  %4151 = vmatpush3.bf16.msra.mxu1 %v1088_v3  ;;  %s6384_s18 = smov (!%p233_p4, %s4526_s18), 1  ;;  %vm308_vm1 = vsmask.f32 3328  ;;  %v4607_v6 = vld [vmem:[%s6180_s1 + $0x8] sm:$0x3]  ;;  %vm745_vm3 = vcmask 31744  }
   0xf   : > { %4460 = vmatprep.subr.msk.bf16.mxu0 %vm794_vm0, %v3620_v4  ;;  %4461 = vmatprep.subr.msk.bf16.mxu1 %vm794_vm0, %v3653_v5  ;;  %s4467_s7 = smul.u32 216, %s6384_s18  ;;  %vm309_vm2 = vsmask.f32 7440  ;;  %v4616_v7 = vsel %vm794_vm0, %v3620_v4, 0  ;;  %v1687_v8 = vsel %vm794_vm0, %v3653_v5, 0  ;;  %v4621_v9 = vsel %vm794_vm0, %v4607_v6, 0 }
  0x10   : > { %vm4660_vm4 = vmor %vm308_vm1, %vm309_vm2  ;;  %vm1267_vm5 = vcmask 1042432   ;;  %vm1268_vm6 = vcmask 1046532   ;;  %vm3078_vm8 = vcmask 261120   ;;  %s3817_s6 = sshll.u32 %s6384_s18, 7 }
  0x11   : > { %s4613_s10 = scalar_lea.vmem %s6179_s0, %s4467_s7  ;;  %vm5071_vm7 = vmor %vm1267_vm5, %vm1268_vm6  ;;  %s6122_s9 = scalar_lea.vmem %s6184_s5, %s3817_s6 }
  0x12   : > { %v4624_v10 = vld [vmem:[%s4613_s10] sm:$0xf]  ;;  %v4627_v11 = vld [vmem:[%s4613_s10 + $0x4] sm:$0xf]  ;;  %v4630_v12 = vld [vmem:[%s4613_s10 + $0x8] sm:$0x1] }
  0x13   : > { %v312_v13 = vshrl.u32 %v4624_v10, 16  ;;  %v315_v14 = vshll.u32 %v4624_v10, 16  ;;  %v321_v15 = vshll.u32 %v4627_v11, 16  ;;  %v325_v16 = vshrl.u32 %v4627_v11, 16  ;;  %v4637_v17 = vld [vmem:[%s4613_s10 + $0xc] sm:$0xf] }
  0x14   : > { %v331_v18 = vshll.u32 %v4630_v12, 16  ;;  %v3572_v20 = vcombine.low %v4624_v10, %v4627_v11  ;;  %v4644_v21 = vld [vmem:[%s4613_s10 + $0x10] sm:$0xf]  ;;  %v4647_v22 = vld [vmem:[%s4613_s10 + $0x14] sm:$0x1]  ;;  %v336_v28 = vshrl.u32 %v4637_v17, 16 }
  0x15   : > { %v314_v23 = vrot.slane %v312_v13, 4  ;;  %v317_v24 = vrot.slane %v315_v14, 5  ;;  %v323_v25 = vrot.slane %v321_v15, 5  ;;  %v327_v26 = vrot.slane %v325_v16, 4  ;;  %v4656_v35 = vld [vmem:[%s4613_s10 + $0x18] sm:$0xf] }
  0x16   : > { %v333_v27 = vrot.slane %v331_v18, 5  ;;  %4152 = vmatprep.mubr.msk.bf16.mxu1 %vm745_vm3, %v3572_v20  ;;  %v339_v29 = vshll.u32 %v4637_v17, 16  ;;  %v345_v30 = vshll.u32 %v4644_v21, 16  ;;  %v349_v33 = vshrl.u32 %v4644_v21, 16  ;;  %v4666_v45 = vld [vmem:[%s4613_s10 + $0x1c] sm:$0xf] }
  0x17   : > { %v318_v31 = vor.u32 %v317_v24, %v314_v23  ;;  %v328_v32 = vor.u32 %v327_v26, %v323_v25  ;;  %v355_v34 = vshll.u32 %v4647_v22, 16  ;;  %v338_v37 = vrot.slane %v336_v28, 4  ;;  %v4674_v49 = vld [vmem:[%s4613_s10 + $0x20] sm:$0x1]  ;;  %v4683_v55 = vld [vmem:[%s4613_s10 + $0x24] sm:$0xf] }
  0x18   : > { %v341_v38 = vrot.slane %v339_v29, 5  ;;  %v347_v39 = vrot.slane %v345_v30, 5  ;;  %v351_v43 = vrot.slane %v349_v33, 4  ;;  %v4671_v48 = vcombine.low %v4637_v17, %v4644_v21  ;;  %v4691_v0 = vld [vmem:[%s4613_s10 + $0x28] sm:$0xf] }
  0x19   : > { %v319_v41 = vrot.slane %v318_v31, 4  ;;  %v329_v42 = vrot.slane %v328_v32, 4  ;;  %v357_v44 = vrot.slane %v355_v34, 5  ;;  %v360_v50 = vshrl.u32 %v4656_v35, 16  ;;  %v4701_v4 = vld [vmem:[%s4613_s10 + $0x2c] sm:$0x1] }
  0x1a   : > { %v342_v46 = vor.u32 %v341_v38, %v338_v37  ;;  %v352_v53 = vor.u32 %v351_v43, %v347_v39  ;;  %v363_v54 = vshll.u32 %v4656_v35, 16  ;;  %4153 = vmatmul.mubr.msk.bf16.vlgmr.msra.gmra.mxu1 %vm745_vm3, %v4671_v48  ;;  %v369_v59 = vshll.u32 %v4666_v45, 16  ;;  %v4707_v16 = vld [vmem:[%s4613_s10 + $0x30] sm:$0xf]  ;;  %v4718_v29 = vld [vmem:[%s4613_s10 + $0x34] sm:$0xf] }
  0x1b   : > { %v324_v51 = vsel %vm4660_vm4, %v319_v41, %v323_v25  ;;  %v334_v52 = vsel %vm4660_vm4, %v329_v42, %v333_v27  ;;  %v362_v58 = vrot.slane %v360_v50, 4  ;;  %v373_v62 = vshrl.u32 %v4666_v45, 16  ;;  %4219 = vmatpush3.bf16.msra.mxu1 %v1687_v8  ;;  %v4727_v33 = vld [vmem:[%s4613_s10 + $0x38] sm:$0x1]  ;;  %v4868_v19 = vld [vmem:[%s4613_s10 + $0x70] sm:$0xf] }
  0x1c   : > { %v3540_v56 = vcombine.low %v324_v51, %v334_v52  ;;  %v343_v57 = vrot.slane %v342_v46, 4  ;;  %v353_v60 = vrot.slane %v352_v53, 4  ;;  %v365_v61 = vrot.slane %v363_v54, 5  ;;  %v4744_v53 = vld [vmem:[%s4613_s10 + $0x3c] sm:$0xf] }
  0x1d   : > { %v379_v63 = vshll.u32 %v4674_v49, 16  ;;  %v371_v2 = vrot.slane %v369_v59, 5  ;;  %v4698_v3 = vcombine.low %v4656_v35, %v4666_v45  ;;  %v384_v5 = vshrl.u32 %v4683_v55, 16  ;;  %v4749_v59 = vld [vmem:[%s4613_s10 + $0x40] sm:$0xf] }
  0x1e   : > { %4118 = vmatprep.mubr.msk.bf16.mxu0 %vm745_vm3, %v3540_v56  ;;  %v348_v1 = vsel %vm4660_vm4, %v343_v57, %v347_v39  ;;  %v358_v13 = vsel %vm4660_vm4, %v353_v60, %v357_v44  ;;  %v366_v14 = vor.u32 %v365_v61, %v362_v58  ;;  %v375_v8 = vrot.slane %v373_v62, 4 }
  0x1f   : > { %v381_v15 = vrot.slane %v379_v63, 5  ;;  %v4709_v18 = vcombine.low %v348_v1, %v358_v13  ;;  %4156 = vmatprep.mubr.msk.bf16.mxu1 %vm745_vm3, %v4698_v3  ;;  %v386_v20 = vrot.slane %v384_v5, 4  ;;  %v387_v23 = vshll.u32 %v4683_v55, 16 }
  0x20   : > { %v393_v24 = vshll.u32 %v4691_v0, 16  ;;  %v367_v25 = vrot.slane %v366_v14, 4  ;;  %v376_v26 = vor.u32 %v375_v8, %v371_v2  ;;  %v397_v27 = vshrl.u32 %v4691_v0, 16 }
  0x21   : > { %6242 = vst [vmem:[#allocation2_spill] sm:$0xff] %v4709_v18  ;;  %v403_v28 = vshll.u32 %v4701_v4, 16  ;;  %4119 = vmatmul.mubr.msk.bf16.vlgmr.msra.gmra.mxu0 %vm745_vm3, %v4709_v18  ;;  %v389_v30 = vrot.slane %v387_v23, 5  ;;  %v4724_v32 = vcombine.low %v4683_v55, %v4691_v0  ;;  %v408_v34 = vshrl.u32 %v4707_v16, 16  ;;  %v4771_v23 = vld [vmem:[%s4613_s10 + $0x48] sm:$0xf] }
  0x22   : > { %v395_v31 = vrot.slane %v393_v24, 5  ;;  %4185 = vmatpush3.bf16.msra.mxu0 %v4616_v7  ;;  %v372_v37 = vsel %vm4660_vm4, %v367_v25, %v371_v2  ;;  %v377_v38 = vrot.slane %v376_v26, 4  ;;  %v399_v39 = vrot.slane %v397_v27, 4  ;;  %v4760_v2 = vld [vmem:[%s4613_s10 + $0x44] sm:$0x1] }
  0x23   : > { %v405_v41 = vrot.slane %v403_v28, 5  ;;  %v390_v42 = vor.u32 %v389_v30, %v386_v20  ;;  %4157 = vmatmul.mubr.msk.bf16.gmra.mxu1 %vm745_vm3, %v4724_v32  ;;  %v410_v43 = vrot.slane %v408_v34, 4  ;;  %v411_v44 = vshll.u32 %v4707_v16, 16  ;;  %4462 = vmatprep.subr.msk.bf16.mxu0 %vm794_vm0, %v4607_v6 }
  0x24   : > { %v417_v46 = vshll.u32 %v4718_v29, 16  ;;  %v382_v7 = vsel %vm4660_vm4, %v377_v38, %v381_v15  ;;  %v400_v50 = vor.u32 %v399_v39, %v395_v31  ;;  %v421_v51 = vshrl.u32 %v4718_v29, 16 }
  0x25   : > { %v427_v52 = vshll.u32 %v4727_v33, 16  ;;  %v4746_v54 = vcombine.low %v372_v37, %v382_v7  ;;  %v391_v56 = vrot.slane %v390_v42, 4  ;;  %v413_v57 = vrot.slane %v411_v44, 5  ;;  %v4777_v37 = vld [vmem:[%s4613_s10 + $0x4c] sm:$0xf] }
  0x26   : > { %v419_v58 = vrot.slane %v417_v46, 5  ;;  %v401_v6 = vrot.slane %v400_v50, 4  ;;  %v423_v60 = vrot.slane %v421_v51, 4  ;;  %v4753_v62 = vcombine.low %v4707_v16, %v4718_v29  ;;  %v4788_v42 = vld [vmem:[%s4613_s10 + $0x50] sm:$0x1] }
  0x27   : > { %6243 = vst [vmem:[#allocation3_spill] sm:$0xff] %v4746_v54  ;;  %v429_v61 = vrot.slane %v427_v52, 5  ;;  %4122 = vmatprep.mubr.msk.bf16.mxu0 %vm745_vm3, %v4746_v54  ;;  %v396_v63 = vsel %vm4660_vm4, %v391_v56, %v395_v31  ;;  %v414_v1 = vor.u32 %v413_v57, %v410_v43  ;;  %v432_v5 = vshrl.u32 %v4744_v53, 16  ;;  %v4795_v51 = vld [vmem:[%s4613_s10 + $0x54] sm:$0xf] }
  0x28   : > { %v435_v13 = vshll.u32 %v4744_v53, 16  ;;  %v406_v14 = vsel %vm4660_vm4, %v401_v6, %v405_v41  ;;  %v424_v8 = vor.u32 %v423_v60, %v419_v58  ;;  %4160 = vmatprep.mubr.msk.bf16.mxu1 %vm745_vm3, %v4753_v62  ;;  %v441_v15 = vshll.u32 %v4749_v59, 16 }
  0x29   : > { %v445_v20 = vshrl.u32 %v4749_v59, 16  ;;  %v4773_v24 = vcombine.low %v396_v63, %v406_v14  ;;  %v415_v25 = vrot.slane %v414_v1, 4  ;;  %v434_v26 = vrot.slane %v432_v5, 4  ;;  %v4805_v1 = vld [vmem:[%s4613_s10 + $0x58] sm:$0xf] }
  0x2a   : > { %v437_v27 = vrot.slane %v435_v13, 5  ;;  %v425_v28 = vrot.slane %v424_v8, 4  ;;  %v443_v30 = vrot.slane %v441_v15, 5  ;;  %v451_v34 = vshll.u32 %v4760_v2, 16  ;;  %v4816_v8 = vld [vmem:[%s4613_s10 + $0x5c] sm:$0x1] }
  0x2b   : > { %6244 = vst [vmem:[#allocation4_spill] sm:$0xff] %v4773_v24  ;;  %v447_v31 = vrot.slane %v445_v20, 4  ;;  %4123 = vmatmul.mubr.msk.bf16.gmra.mxu0 %vm745_vm3, %v4773_v24  ;;  %v420_v38 = vsel %vm4660_vm4, %v415_v25, %v419_v58  ;;  %v4785_v41 = vcombine.low %v4744_v53, %v4749_v59  ;;  %v456_v43 = vshrl.u32 %v4771_v23, 16 }
  0x2c   : > { %v438_v39 = vor.u32 %v437_v27, %v434_v26  ;;  %v430_v44 = vsel %vm4660_vm4, %v425_v28, %v429_v61  ;;  %v453_v7 = vrot.slane %v451_v34, 5  ;;  %v459_v50 = vshll.u32 %v4771_v23, 16  ;;  %v4822_v28 = vld [vmem:[%s4613_s10 + $0x60] sm:$0xf] }
  0x2d   : > { %6245 = vst [vmem:[#allocation5_spill] sm:$0xff] %v4785_v41  ;;  %v448_v46 = vor.u32 %v447_v31, %v443_v30  ;;  %v4797_v52 = vcombine.low %v420_v38, %v430_v44  ;;  %4161 = vmatmul.mubr.msk.bf16.gmra.mxu1 %vm745_vm3, %v4785_v41  ;;  %v458_v57 = vrot.slane %v456_v43, 4  ;;  %v465_v58 = vshll.u32 %v4777_v37, 16 }
  0x2e   : > { %v439_v56 = vrot.slane %v438_v39, 4  ;;  %v461_v60 = vrot.slane %v459_v50, 5  ;;  %v469_v61 = vshrl.u32 %v4777_v37, 16  ;;  %v475_v63 = vshll.u32 %v4788_v42, 16 }
  0x2f   : > { %6246 = vst [vmem:[#allocation6_spill] sm:$0xff] %v4797_v52  ;;  %v449_v6 = vrot.slane %v448_v46, 4  ;;  %4126 = vmatprep.mubr.msk.bf16.mxu0 %vm745_vm3, %v4797_v52  ;;  %v467_v13 = vrot.slane %v465_v58, 5  ;;  %v4813_v14 = vcombine.low %v4771_v23, %v4777_v37  ;;  %v480_v15 = vshrl.u32 %v4795_v51, 16  ;;  %v4842_v58 = vld [vmem:[%s4613_s10 + $0x68] sm:$0x1] }
  0x30   : > { %v444_v5 = vsel %vm4660_vm4, %v439_v56, %v443_v30  ;;  %v462_v25 = vor.u32 %v461_v60, %v458_v57  ;;  %v471_v26 = vrot.slane %v469_v61, 4  ;;  %v477_v27 = vrot.slane %v475_v63, 5 }
  0x31   : > { %6247 = vst [vmem:[#allocation7_spill] sm:$0xff] %v4813_v14  ;;  %v454_v20 = vsel %vm4660_vm4, %v449_v6, %v453_v7  ;;  %4164 = vmatprep.mubr.msk.bf16.mxu1 %vm745_vm3, %v4813_v14  ;;  %v482_v31 = vrot.slane %v480_v15, 4  ;;  %v483_v34 = vshll.u32 %v4795_v51, 16  ;;  %v489_v38 = vshll.u32 %v4805_v1, 16  ;;  %v4833_v7 = vld [vmem:[%s4613_s10 + $0x64] sm:$0xf] }
  0x32   : > { %v4824_v30 = vcombine.low %v444_v5, %v454_v20  ;;  %v463_v39 = vrot.slane %v462_v25, 4  ;;  %v472_v43 = vor.u32 %v471_v26, %v467_v13  ;;  %v493_v44 = vshrl.u32 %v4805_v1, 16  ;;  %v4850_v15 = vld [vmem:[%s6180_s1 + $0xa] sm:$0x3] }
  0x33   : > { %v499_v46 = vshll.u32 %v4816_v8, 16  ;;  %v485_v50 = vrot.slane %v483_v34, 5  ;;  %v491_v56 = vrot.slane %v489_v38, 5  ;;  %v4839_v57 = vcombine.low %v4795_v51, %v4805_v1  ;;  %6250 = vst [vmem:[#allocation10_spill] sm:$0xff] %v4850_v15  ;;  %4463 = vmatprep.subr.msk.bf16.mxu1 %vm794_vm0, %v4850_v15 }
  0x34   : > { %6248 = vst [vmem:[#allocation8_spill] sm:$0xff] %v4824_v30  ;;  %4127 = vmatmul.mubr.msk.bf16.gmra.mxu0 %vm745_vm3, %v4824_v30  ;;  %v504_v6 = vshrl.u32 %v4822_v28, 16  ;;  %v468_v60 = vsel %vm4660_vm4, %v463_v39, %v467_v13  ;;  %v473_v61 = vrot.slane %v472_v43, 4  ;;  %v495_v63 = vrot.slane %v493_v44, 4  ;;  %v4863_v43 = vld [vmem:[%s4613_s10 + $0x6c] sm:$0xf] }
  0x35   : > { %6249 = vst [vmem:[#allocation9_spill] sm:$0xff] %v4839_v57  ;;  %v501_v5 = vrot.slane %v499_v46, 5  ;;  %v486_v20 = vor.u32 %v485_v50, %v482_v31  ;;  %4165 = vmatmul.mubr.msk.bf16.gmra.mxu1 %vm745_vm3, %v4839_v57  ;;  %v507_v26 = vshll.u32 %v4822_v28, 16  ;;  %v513_v34 = vshll.u32 %v4833_v7, 16 }
  0x36   : > { %v506_v25 = vrot.slane %v504_v6, 4  ;;  %v478_v13 = vsel %vm4660_vm4, %v473_v61, %v477_v27  ;;  %v496_v38 = vor.u32 %v495_v63, %v491_v56  ;;  %v517_v39 = vshrl.u32 %v4833_v7, 16  ;;  %v4879_v63 = vld [vmem:[%s4613_s10 + $0x74] sm:$0x1] }
  0x37   : > { %v523_v31 = vshll.u32 %v4842_v58, 16  ;;  %v4865_v44 = vcombine.low %v468_v60, %v478_v13  ;;  %v487_v46 = vrot.slane %v486_v20, 4  ;;  %v509_v50 = vrot.slane %v507_v26, 5 }
  0x38   : > { %v515_v6 = vrot.slane %v513_v34, 5  ;;  %v497_v47 = vrot.slane %v496_v38, 4  ;;  %v519_v40 = vrot.slane %v517_v39, 4  ;;  %v4872_v27 = vcombine.low %v4822_v28, %v4833_v7 }
  0x39   : > { %6251 = vst [vmem:[#allocation11_spill] sm:$0xff] %v4865_v44  ;;  %v525_v30 = vrot.slane %v523_v31, 5  ;;  %4130 = vmatprep.mubr.msk.bf16.mxu0 %vm745_vm3, %v4865_v44  ;;  %v492_v60 = vsel %vm4660_vm4, %v487_v46, %v491_v56  ;;  %v510_v61 = vor.u32 %v509_v50, %v506_v25  ;;  %v528_v20 = vshrl.u32 %v4863_v43, 16  ;;  %v4890_v25 = vld [vmem:[%s4613_s10 + $0x78] sm:$0xf] }
  0x3a   : > { %6252 = vst [vmem:[#allocation12_spill] sm:$0xff] %v4872_v27  ;;  %v531_v26 = vshll.u32 %v4863_v43, 16  ;;  %v502_v34 = vsel %vm4660_vm4, %v497_v47, %v501_v5  ;;  %v520_v13 = vor.u32 %v519_v40, %v515_v6  ;;  %4168 = vmatprep.mubr.msk.bf16.mxu1 %vm745_vm3, %v4872_v27  ;;  %v537_v38 = vshll.u32 %v4868_v19, 16  ;;  %v4896_v5 = vld [vmem:[%s4613_s10 + $0x7c] sm:$0xf] }
  0x3b   : > { %v541_v56 = vshrl.u32 %v4868_v19, 16  ;;  %v4892_v39 = vcombine.low %v492_v60, %v502_v34  ;;  %v511_v31 = vrot.slane %v510_v61, 4  ;;  %v530_v46 = vrot.slane %v528_v20, 4  ;;  %v4907_v61 = vld [vmem:[%s4613_s10 + $0x80] sm:$0x1] }
  0x3c   : > { %v533_v50 = vrot.slane %v531_v26, 5  ;;  %v521_v44 = vrot.slane %v520_v13, 4  ;;  %v539_v52 = vrot.slane %v537_v38, 5  ;;  %v547_v40 = vshll.u32 %v4879_v63, 16  ;;  %6255 = vst [vmem:[#allocation15_spill] sm:$0xff] %v4907_v61 }
  0x3d   : > { %6253 = vst [vmem:[#allocation13_spill] sm:$0xff] %v4892_v39  ;;  %v543_v47 = vrot.slane %v541_v56, 4  ;;  %4131 = vmatmul.mubr.msk.bf16.gmra.mxu0 %vm745_vm3, %v4892_v39  ;;  %v516_v24 = vsel %vm4660_vm4, %v511_v31, %v515_v6  ;;  %v4904_v60 = vcombine.low %v4863_v43, %v4868_v19  ;;  %v552_v20 = vshrl.u32 %v4890_v25, 16  ;;  %v4914_v56 = vld [vmem:[%s4613_s10 + $0x84] sm:$0xf] }
  0x3e   : > { %v534_v54 = vor.u32 %v533_v50, %v530_v46  ;;  %v526_v26 = vsel %vm4660_vm4, %v521_v44, %v525_v30  ;;  %v549_v13 = vrot.slane %v547_v40, 5  ;;  %v555_v38 = vshll.u32 %v4890_v25, 16  ;;  %6256 = vst [vmem:[#allocation16_spill] sm:$0xff] %v4914_v56 }
  0x3f   : > { %6254 = vst [vmem:[#allocation14_spill] sm:$0xff] %v4904_v60  ;;  %v544_v34 = vor.u32 %v543_v47, %v539_v52  ;;  %v4916_v6 = vcombine.low %v516_v24, %v526_v26  ;;  %4169 = vmatmul.mubr.msk.bf16.gmra.mxu1 %vm745_vm3, %v4904_v60  ;;  %v554_v46 = vrot.slane %v552_v20, 4  ;;  %v561_v50 = vshll.u32 %v4896_v5, 16  ;;  %v4924_v47 = vld [vmem:[%s4613_s10 + $0x88] sm:$0xf] }
  0x40   : > { %v535_v31 = vrot.slane %v534_v54, 4  ;;  %v557_v18 = vrot.slane %v555_v38, 5  ;;  %v565_v30 = vshrl.u32 %v4896_v5, 16  ;;  %v571_v44 = vshll.u32 %v4907_v61, 16  ;;  %6258 = vst [vmem:[#allocation18_spill] sm:$0xff] %v4924_v47 }
  0x41   : > { %6257 = vst [vmem:[#allocation17_spill] sm:$0xff] %v4916_v6  ;;  %v545_v39 = vrot.slane %v544_v34, 4  ;;  %4134 = vmatprep.mubr.msk.bf16.mxu0 %vm745_vm3, %v4916_v6  ;;  %v563_v24 = vrot.slane %v561_v50, 5  ;;  %v4932_v40 = vcombine.low %v4890_v25, %v4896_v5  ;;  %v4935_v20 = vld [vmem:[%s4613_s10 + $0x8c] sm:$0x1]  ;;  %v576_v26 = vshrl.u32 %v4914_v56, 16 }
  0x42   : > { %v540_v54 = vsel %vm4660_vm4, %v535_v31, %v539_v52  ;;  %6260 = vst [vmem:[#allocation20_spill] sm:$0xff] %v4935_v20  ;;  %v558_v38 = vor.u32 %v557_v18, %v554_v46  ;;  %v567_v60 = vrot.slane %v565_v30, 4  ;;  %v573_v27 = vrot.slane %v571_v44, 5  ;;  %v4941_v6 = vld [vmem:[%s4613_s10 + $0x90] sm:$0xf] }
  0x43   : > { %6259 = vst [vmem:[#allocation19_spill] sm:$0xff] %v4932_v40  ;;  %v550_v34 = vsel %vm4660_vm4, %v545_v39, %v549_v13  ;;  %4172 = vmatprep.mubr.msk.bf16.mxu1 %vm745_vm3, %v4932_v40  ;;  %v578_v31 = vrot.slane %v576_v26, 4  ;;  %v579_v50 = vshll.u32 %v4914_v56, 16  ;;  %v585_v15 = vshll.u32 %v4924_v47, 16  ;;  %v4952_v13 = vld [vmem:[%s4613_s10 + $0x94] sm:$0xf] }
  0x44   : > { %v4943_v52 = vcombine.low %v540_v54, %v550_v34  ;;  %v559_v57 = vrot.slane %v558_v38, 4  ;;  %v568_v14 = vor.u32 %v567_v60, %v563_v24  ;;  %v589_v39 = vshrl.u32 %v4924_v47, 16  ;;  %6262 = vst [vmem:[#allocation22_spill] sm:$0xff] %v4952_v13  ;;  %v4961_v54 = vld [vmem:[%s4613_s10 + $0x98] sm:$0x1] }
  0x45   : > { %v595_v18 = vshll.u32 %v4935_v20, 16  ;;  %v581_v46 = vrot.slane %v579_v50, 5  ;;  %v587_v30 = vrot.slane %v585_v15, 5  ;;  %v4958_v44 = vcombine.low %v4914_v56, %v4924_v47  ;;  %6264 = vst [vmem:[#allocation24_spill] sm:$0xff] %v4961_v54 }
  0x46   : > { %6261 = vst [vmem:[#allocation21_spill] sm:$0xff] %v4943_v52  ;;  %4135 = vmatmul.mubr.msk.bf16.gmra.mxu0 %vm745_vm3, %v4943_v52  ;;  %v600_v60 = vshrl.u32 %v4941_v6, 16  ;;  %v564_v26 = vsel %vm4660_vm4, %v559_v57, %v563_v24  ;;  %v569_v34 = vrot.slane %v568_v14, 4  ;;  %v591_v38 = vrot.slane %v589_v39, 4  ;;  %v4975_v24 = vld [vmem:[%s4613_s10 + $0x9c] sm:$0xf] }
  0x47   : > { %6263 = vst [vmem:[#allocation23_spill] sm:$0xff] %v4958_v44  ;;  %v597_v40 = vrot.slane %v595_v18, 5  ;;  %v582_v20 = vor.u32 %v581_v46, %v578_v31  ;;  %4173 = vmatmul.mubr.msk.bf16.gmra.mxu1 %vm745_vm3, %v4958_v44  ;;  %v603_v50 = vshll.u32 %v4941_v6, 16  ;;  %v609_v52 = vshll.u32 %v4952_v13, 16  ;;  %6265 = vst [vmem:[#allocation25_spill] sm:$0xff] %v4975_v24 }
  0x48   : > { %v602_v15 = vrot.slane %v600_v60, 4  ;;  %v574_v47 = vsel %vm4660_vm4, %v569_v34, %v573_v27  ;;  %v592_v56 = vor.u32 %v591_v38, %v587_v30  ;;  %v613_v57 = vshrl.u32 %v4952_v13, 16  ;;  %v4980_v60 = vld [vmem:[%s4613_s10 + $0xa0] sm:$0xf] }
  0x49   : > { %v619_v14 = vshll.u32 %v4961_v54, 16  ;;  %v4977_v31 = vcombine.low %v564_v26, %v574_v47  ;;  %v583_v39 = vrot.slane %v582_v20, 4  ;;  %v605_v18 = vrot.slane %v603_v50, 5  ;;  %6267 = vst [vmem:[#allocation27_spill] sm:$0xff] %v4980_v60  ;;  %v4991_v20 = vld [vmem:[%s4613_s10 + $0xa4] sm:$0x1] }
  0x4a   : > { %v611_v46 = vrot.slane %v609_v52, 5  ;;  %v593_v44 = vrot.slane %v592_v56, 4  ;;  %v615_v61 = vrot.slane %v613_v57, 4  ;;  %v4984_v27 = vcombine.low %v4941_v6, %v4952_v13  ;;  %6269 = vst [vmem:[#allocation29_spill] sm:$0xff] %v4991_v20 }
  0x4b   : > { %6266 = vst [vmem:[#allocation26_spill] sm:$0xff] %v4977_v31  ;;  %v621_v41 = vrot.slane %v619_v14, 5  ;;  %4138 = vmatprep.mubr.msk.bf16.mxu0 %vm745_vm3, %v4977_v31  ;;  %v588_v47 = vsel %vm4660_vm4, %v583_v39, %v587_v30  ;;  %v606_v26 = vor.u32 %v605_v18, %v602_v15  ;;  %v624_v52 = vshrl.u32 %v4975_v24, 16  ;;  %v5002_v30 = vld [vmem:[%s4613_s10 + $0xa8] sm:$0xf] }
  0x4c   : > { %6268 = vst [vmem:[#allocation28_spill] sm:$0xff] %v4984_v27  ;;  %v627_v34 = vshll.u32 %v4975_v24, 16  ;;  %v598_v56 = vsel %vm4660_vm4, %v593_v44, %v597_v40  ;;  %v616_v38 = vor.u32 %v615_v61, %v611_v46  ;;  %4176 = vmatprep.mubr.msk.bf16.mxu1 %vm745_vm3, %v4984_v27  ;;  %v633_v50 = vshll.u32 %v4980_v60, 16  ;;  %6270 = vst [vmem:[#allocation30_spill] sm:$0xff] %v5002_v30  ;;  %v5008_v27 = vld [vmem:[%s4613_s10 + $0xac] sm:$0xf] }
  0x4d   : > { %v637_v57 = vshrl.u32 %v4980_v60, 16  ;;  %v5004_v15 = vcombine.low %v588_v47, %v598_v56  ;;  %v607_v14 = vrot.slane %v606_v26, 4  ;;  %v626_v39 = vrot.slane %v624_v52, 4  ;;  %6272 = vst [vmem:[#allocation32_spill] sm:$0xff] %v5008_v27  ;;  %v5019_v52 = vld [vmem:[%s4613_s10 + $0xb0] sm:$0x1] }
  0x4e   : > { %v629_v18 = vrot.slane %v627_v34, 5  ;;  %v617_v40 = vrot.slane %v616_v38, 4  ;;  %v635_v61 = vrot.slane %v633_v50, 5  ;;  %v643_v31 = vshll.u32 %v4991_v20, 16  ;;  %6274 = vst [vmem:[#allocation34_spill] sm:$0xff] %v5019_v52 }
  0x4f   : > { %6271 = vst [vmem:[#allocation31_spill] sm:$0xff] %v5004_v15  ;;  %v639_v44 = vrot.slane %v637_v57, 4  ;;  %4139 = vmatmul.mubr.msk.bf16.gmra.mxu0 %vm745_vm3, %v5004_v15  ;;  %v612_v47 = vsel %vm4660_vm4, %v607_v14, %v611_v46  ;;  %v5016_v26 = vcombine.low %v4975_v24, %v4980_v60  ;;  %v648_v34 = vshrl.u32 %v5002_v30, 16  ;;  %v5026_v20 = vld [vmem:[%s4613_s10 + $0xb4] sm:$0xf] }
  0x50   : > { %v630_v56 = vor.u32 %v629_v18, %v626_v39  ;;  %v622_v38 = vsel %vm4660_vm4, %v617_v40, %v621_v41  ;;  %v645_v57 = vrot.slane %v643_v31, 5  ;;  %v651_v15 = vshll.u32 %v5002_v30, 16  ;;  %v5036_v40 = vld [vmem:[%s4613_s10 + $0xb8] sm:$0xf] }
  0x51   : > { %6273 = vst [vmem:[#allocation33_spill] sm:$0xff] %v5016_v26  ;;  %v640_v50 = vor.u32 %v639_v44, %v635_v61  ;;  %v5028_v46 = vcombine.low %v612_v47, %v622_v38  ;;  %4177 = vmatmul.mubr.msk.bf16.gmra.mxu1 %vm745_vm3, %v5016_v26  ;;  %v650_v39 = vrot.slane %v648_v34, 4  ;;  %v657_v18 = vshll.u32 %v5008_v27, 16  ;;  %v5047_v34 = vld [vmem:[%s4613_s10 + $0xbc] sm:$0x1] }
  0x52   : > { %v631_v14 = vrot.slane %v630_v56, 4  ;;  %v653_v24 = vrot.slane %v651_v15, 5  ;;  %v661_v41 = vshrl.u32 %v5008_v27, 16  ;;  %v667_v31 = vshll.u32 %v5019_v52, 16 }
  0x53   : > { %6275 = vst [vmem:[#allocation35_spill] sm:$0xff] %v5028_v46  ;;  %v641_v60 = vrot.slane %v640_v50, 4  ;;  %4142 = vmatprep.mubr.msk.bf16.mxu0 %vm745_vm3, %v5028_v46  ;;  %v659_v47 = vrot.slane %v657_v18, 5  ;;  %v5044_v56 = vcombine.low %v5002_v30, %v5008_v27  ;;  %v672_v15 = vshrl.u32 %v5026_v20, 16 }
  0x54   : > { %v636_v44 = vsel %vm4660_vm4, %v631_v14, %v635_v61  ;;  %v654_v50 = vor.u32 %v653_v24, %v650_v39  ;;  %v663_v26 = vrot.slane %v661_v41, 4  ;;  %v669_v52 = vrot.slane %v667_v31, 5 }
  0x55   : > { %v646_v38 = vsel %vm4660_vm4, %v641_v60, %v645_v57  ;;  %4180 = vmatprep.mubr.msk.bf16.mxu1 %vm745_vm3, %v5044_v56  ;;  %v674_v61 = vrot.slane %v672_v15, 4  ;;  %v675_v14 = vshll.u32 %v5026_v20, 16  ;;  %v681_v18 = vshll.u32 %v5036_v40, 16 }
  0x56   : > { %v5052_v54 = vcombine.low %v636_v44, %v646_v38  ;;  %v655_v46 = vrot.slane %v654_v50, 4  ;;  %v664_v27 = vor.u32 %v663_v26, %v659_v47  ;;  %v685_v30 = vshrl.u32 %v5036_v40, 16 }
  0x57   : > { %v691_v13 = vshll.u32 %v5047_v34, 16  ;;  %v677_v24 = vrot.slane %v675_v14, 5  ;;  %v683_v60 = vrot.slane %v681_v18, 5  ;;  %v5064_v57 = vcombine.low %v5026_v20, %v5036_v40 }
  0x58   : > { %4143 = vmatmul.mubr.msk.bf16.gmra.mxu0 %vm745_vm3, %v5052_v54  ;;  %v3604_v39 = vrot.slane %v4624_v10, 9  ;;  %v660_v41 = vsel %vm4660_vm4, %v655_v46, %v659_v47  ;;  %v665_v31 = vrot.slane %v664_v27, 4  ;;  %v687_v26 = vrot.slane %v685_v30, 4 }
  0x59   : > { %v693_v44 = vrot.slane %v691_v13, 5  ;;  %v678_v38 = vor.u32 %v677_v24, %v674_v61  ;;  %4181 = vmatmul.mubr.msk.bf16.gmra.mxu1 %vm745_vm3, %v5064_v57  ;;  %v1272_v50 = vrot.slane %v4627_v11, 5  ;;  %v3605_v10 = vrot.slane %v4637_v17, 9 }
  0x5a   : > { %v6278_v14 = vrot.slane %v4644_v21, 5  ;;  %v670_v13 = vsel %vm4660_vm4, %v665_v31, %v669_v52  ;;  %v688_v27 = vor.u32 %v687_v26, %v683_v60  ;;  %4220 = vmatprep.mubr.msk.bf16.mxu1 %vm745_vm3, %v4671_v48  ;;  %v3606_v30 = vrot.slane %v4656_v35, 9 }
  0x5b   : > { %v1286_v47 = vrot.slane %v4666_v45, 5  ;;  %v5087_v61 = vcombine.low %v660_v41, %v670_v13  ;;  %v679_v18 = vrot.slane %v678_v38, 4  ;;  %v1273_v11 = vsel %vm5071_vm7, %v3604_v39, %v1272_v50 }
  0x5c   : > { %v1281_v46 = vrot.slane %v6278_v14, 4  ;;  %v1274_v17 = vrot.slane %v1272_v50, 4  ;;  %v689_v24 = vrot.slane %v688_v27, 4  ;;  %v1280_v52 = vsel %vm5071_vm7, %v3605_v10, %v6278_v14 }
  0x5d   : > { %v6279_v31 = vrot.slane %v4647_v22, 5  ;;  %v1287_v45 = vsel %vm5071_vm7, %v3606_v30, %v1286_v47  ;;  %4146 = vmatprep.mubr.msk.bf16.mxu0 %vm745_vm3, %v5087_v61  ;;  %v684_v48 = vsel %vm4660_vm4, %v679_v18, %v683_v60  ;;  %v6280_v39 = vrot.slane %v4630_v12, 5 }
  0x5e   : > { %v1288_v22 = vrot.slane %v1286_v47, 4  ;;  %v694_v26 = vsel %vm4660_vm4, %v689_v24, %v693_v44  ;;  %v1289_v50 = vrot.slane %v4674_v49, 5  ;;  %v3607_v10 = vrot.slane %v4683_v55, 9 }
  0x5f   : > { %v1283_v35 = vsel %vm5071_vm7, %v1281_v46, %v6279_v31  ;;  %v1276_v21 = vsel %vm5071_vm7, %v1274_v17, %v6280_v39  ;;  %v5115_v46 = vcombine.low %v684_v48, %v694_v26  ;;  %v1293_v60 = vrot.slane %v4691_v0, 5 }
  0x60   : > { %v5109_v41 = vcombine.low %v1280_v52, %v1283_v35  ;;  %v3621_v38 = vcombine.low %v1273_v11, %v1276_v21  ;;  %v1296_v12 = vrot.slane %v4701_v4, 5  ;;  %v3608_v13 = vrot.slane %v4707_v16, 9 }
  0x61   : > { %v1290_v27 = vsel %vm5071_vm7, %v1288_v22, %v1289_v50  ;;  %v1300_v30 = vrot.slane %v4718_v29, 5  ;;  %v1303_v44 = vrot.slane %v4727_v33, 5  ;;  %v3609_v47 = vrot.slane %v4744_v53, 9  ;;  %4147 = vmatmul.mubr.msk.bf16.gmra.mxu0 %vm745_vm3, %v5115_v46  ;;  %4221 = vmatmul.mubr.msk.bf16.vlgmr.msra.gmra.mxu1 %vm745_vm3, %v4698_v3 }
  0x62   : > { %v5129_v49 = vcombine.low %v1287_v45, %v1290_v27  ;;  %v1294_v55 = vsel %vm5071_vm7, %v3607_v10, %v1293_v60  ;;  %v1295_v0 = vrot.slane %v1293_v60, 4  ;;  %v1307_v4 = vrot.slane %v4749_v59, 5  ;;  %4186 = vmatprep.mubr.msk.bf16.mxu0 %vm745_vm3, %v3621_v38  ;;  %4224 = vmatprep.mubr.msk.bf16.mxu1 %vm745_vm3, %v4724_v32  ;;  %v6281_v27 = vld [vmem:[#allocation5_spill] sm:$0xff] }
  0x63   : > { %v1301_v16 = vsel %vm5071_vm7, %v3608_v13, %v1300_v30  ;;  %v1302_v29 = vrot.slane %v1300_v30, 4  ;;  %v1310_v33 = vrot.slane %v4760_v2, 5  ;;  %v3610_v53 = vrot.slane %v4771_v23, 9 }
  0x64   : > { %v1297_v18 = vsel %vm5071_vm7, %v1295_v0, %v1296_v12  ;;  %v1308_v11 = vsel %vm5071_vm7, %v3609_v47, %v1307_v4  ;;  %v1309_v59 = vrot.slane %v1307_v4, 4  ;;  %v1314_v17 = vrot.slane %v4777_v37, 5 }
  0x65   : > { %v5146_v24 = vcombine.low %v1294_v55, %v1297_v18  ;;  %v1304_v14 = vsel %vm5071_vm7, %v1302_v29, %v1303_v44  ;;  %v1317_v52 = vrot.slane %v4788_v42, 5  ;;  %v3611_v2 = vrot.slane %v4795_v51, 9  ;;  %v6283_v44 = vld [vmem:[#allocation16_spill] sm:$0xff]  ;;  %v6284_v29 = vld [vmem:[#allocation18_spill] sm:$0xff] }
  0x66   : > { %v5152_v31 = vcombine.low %v1301_v16, %v1304_v14  ;;  %v1311_v23 = vsel %vm5071_vm7, %v1309_v59, %v1310_v33  ;;  %v1315_v35 = vsel %vm5071_vm7, %v3610_v53, %v1314_v17  ;;  %v1316_v45 = vrot.slane %v1314_v17, 4  ;;  %v6285_v53 = vld [vmem:[#allocation20_spill] sm:$0xff]  ;;  %v6286_v17 = vld [vmem:[#allocation22_spill] sm:$0xff] }
  0x67   : > { %v5158_v48 = vcombine.low %v1308_v11, %v1311_v23  ;;  %v1321_v37 = vrot.slane %v4805_v1, 5  ;;  %v1324_v39 = vrot.slane %v4816_v8, 5  ;;  %v3612_v21 = vrot.slane %v4822_v28, 9  ;;  %v5176_v8 = vld [vmem:[%s6180_s1 + $0xc] sm:$0x3]  ;;  %v6288_v23 = vld [vmem:[#allocation25_spill] sm:$0xff] }
  0x68   : > { %v1318_v42 = vsel %vm5071_vm7, %v1316_v45, %v1317_v52  ;;  %v1328_v51 = vrot.slane %v4833_v7, 5  ;;  %v1331_v22 = vrot.slane %v4842_v58, 5  ;;  %v3613_v26 = vrot.slane %v4863_v43, 9  ;;  %v6287_v52 = vld [vmem:[#allocation24_spill] sm:$0xff] }
  0x69   : > { %v5168_v38 = vcombine.low %v1315_v35, %v1318_v42  ;;  %v1322_v50 = vsel %vm5071_vm7, %v3611_v2, %v1321_v37  ;;  %v1323_v10 = vrot.slane %v1321_v37, 4  ;;  %v1335_v1 = vrot.slane %v4868_v19, 5  ;;  %4187 = vmatmul.mubr.msk.bf16.vlgmr.msra.gmra.mxu0 %vm745_vm3, %v5109_v41  ;;  %4225 = vmatmul.mubr.msk.bf16.gmra.mxu1 %vm745_vm3, %v4753_v62 }
  0x6a   : > { %v1329_v28 = vsel %vm5071_vm7, %v3612_v21, %v1328_v51  ;;  %v1330_v7 = vrot.slane %v1328_v51, 4  ;;  %v1338_v58 = vrot.slane %v4879_v63, 5  ;;  %v3614_v43 = vrot.slane %v4890_v25, 9  ;;  %4253 = vmatpush3.bf16.msra.mxu0 %v4621_v9  ;;  %4190 = vmatprep.mubr.msk.bf16.mxu0 %vm745_vm3, %v5129_v49  ;;  %v6282_v25 = vld [vmem:[#allocation15_spill] sm:$0xff] }
  0x6b   : > { %v1325_v19 = vsel %vm5071_vm7, %v1323_v10, %v1324_v39  ;;  %v1336_v60 = vsel %vm5071_vm7, %v3613_v26, %v1335_v1  ;;  %v1337_v12 = vrot.slane %v1335_v1, 4  ;;  %v1342_v13 = vrot.slane %v4896_v5, 5  ;;  %4228 = vmatprep.mubr.msk.bf16.mxu1 %vm745_vm3, %v6281_v27  ;;  %4464 = vmatprep.subr.msk.bf16.mxu0 %vm794_vm0, %v5176_v8  ;;  %v6289_v21 = vld [vmem:[#allocation27_spill] sm:$0xff] }
  0x6c   : > { %v5196_v63 = vcombine.low %v1322_v50, %v1325_v19  ;;  %v1332_v9 = vsel %vm5071_vm7, %v1330_v7, %v1331_v22  ;;  %v1345_v30 = vrot.slane %v6282_v25, 5  ;;  %v3615_v47 = vrot.slane %v6283_v44, 9  ;;  %v6290_v22 = vld [vmem:[#allocation29_spill] sm:$0xff]  ;;  %v6291_v50 = vld [vmem:[#allocation30_spill] sm:$0xff]  ;;  %v6292_v1 = vld [vmem:[#allocation7_spill] sm:$0xff] }
  0x6d   : > { %v5204_v55 = vcombine.low %v1329_v28, %v1332_v9  ;;  %v1339_v5 = vsel %vm5071_vm7, %v1337_v12, %v1338_v58  ;;  %v1343_v0 = vsel %vm5071_vm7, %v3614_v43, %v1342_v13  ;;  %v1344_v4 = vrot.slane %v1342_v13, 4  ;;  %v6293_v43 = vld [vmem:[#allocation32_spill] sm:$0xff]  ;;  %v6295_v9 = vld [vmem:[#allocation34_spill] sm:$0xff] }
  0x6e   : > { %v5210_v16 = vcombine.low %v1336_v60, %v1339_v5  ;;  %v1349_v33 = vrot.slane %v6284_v29, 5  ;;  %v1352_v18 = vrot.slane %v6285_v53, 5  ;;  %v3616_v11 = vrot.slane %v4941_v6, 9  ;;  %v6294_v60 = vld [vmem:[#allocation9_spill] sm:$0xff] }
  0x6f   : > { %v1346_v59 = vsel %vm5071_vm7, %v1344_v4, %v1345_v30  ;;  %v1356_v14 = vrot.slane %v6286_v17, 5  ;;  %v1359_v2 = vrot.slane %v6287_v52, 5  ;;  %v3617_v35 = vrot.slane %v6288_v23, 9  ;;  %v6296_v17 = vld [vmem:[#allocation10_spill] sm:$0xff]  ;;  %v6299_v23 = vld [vmem:[#allocation19_spill] sm:$0xff] }
  0x70   : > { %v5220_v45 = vcombine.low %v1343_v0, %v1346_v59  ;;  %v1350_v37 = vsel %vm5071_vm7, %v3615_v47, %v1349_v33  ;;  %v1351_v39 = vrot.slane %v1349_v33, 4  ;;  %v1363_v42 = vrot.slane %v6289_v21, 5  ;;  %v301_v21 = vld [vmem:[%s4613_s10 + $0xc0] sm:$0xf] }
  0x71   : > { %v1357_v6 = vsel %vm5071_vm7, %v3616_v11, %v1356_v14  ;;  %v1358_v51 = vrot.slane %v1356_v14, 4  ;;  %v1366_v26 = vrot.slane %v6290_v22, 5  ;;  %v3618_v10 = vrot.slane %v6291_v50, 9  ;;  %4191 = vmatmul.mubr.msk.bf16.gmra.mxu0 %vm745_vm3, %v5146_v24  ;;  %4229 = vmatmul.mubr.msk.bf16.gmra.mxu1 %vm745_vm3, %v6292_v1  ;;  %v6303_v22 = vld [vmem:[#allocation2_spill] sm:$0xff]  ;;  %v6304_v50 = vld [vmem:[#allocation3_spill] sm:$0xff] }
  0x72   : > { %v1353_v28 = vsel %vm5071_vm7, %v1351_v39, %v1352_v18  ;;  %v1364_v7 = vsel %vm5071_vm7, %v3617_v35, %v1363_v42  ;;  %v1365_v58 = vrot.slane %v1363_v42, 4  ;;  %v1370_v19 = vrot.slane %v6293_v43, 5  ;;  %4194 = vmatprep.mubr.msk.bf16.mxu0 %vm745_vm3, %v5152_v31  ;;  %4232 = vmatprep.mubr.msk.bf16.mxu1 %vm745_vm3, %v6294_v60  ;;  %v6300_v35 = vld [vmem:[#allocation23_spill] sm:$0xff]  ;;  %v6302_v39 = vld [vmem:[#allocation33_spill] sm:$0xff]  ;;  %v302_v42 = vld [vmem:[%s4613_s10 + $0xc4] sm:$0xf] }
  0x73   : > { %v5242_v12 = vcombine.low %v1350_v37, %v1353_v28  ;;  %v1360_v13 = vsel %vm5071_vm7, %v1358_v51, %v1359_v2  ;;  %v1373_v25 = vrot.slane %v6295_v9, 5  ;;  %v3619_v30 = vrot.slane %v5026_v20, 9  ;;  %v3726_v20 = vld [vmem:[%s6180_s1 + $0xe] sm:$0x3]  ;;  %v6298_v2 = vld [vmem:[#allocation14_spill] sm:$0xff]  ;;  %v6301_v37 = vld [vmem:[#allocation28_spill] sm:$0xff] }
  0x74   : > { %v5248_v44 = vcombine.low %v1357_v6, %v1360_v13  ;;  %v1367_v47 = vsel %vm5071_vm7, %v1365_v58, %v1366_v26  ;;  %v1371_v5 = vsel %vm5071_vm7, %v3618_v10, %v1370_v19  ;;  %v1372_v0 = vrot.slane %v1370_v19, 4  ;;  %v6305_v10 = vld [vmem:[#allocation4_spill] sm:$0xff]  ;;  %v6309_v58 = vld [vmem:[#allocation13_spill] sm:$0xff] }
  0x75   : > { %v5254_v4 = vcombine.low %v1364_v7, %v1367_v47  ;;  %v1377_v29 = vrot.slane %v5036_v40, 5  ;;  %v1380_v33 = vrot.slane %v5047_v34, 5  ;;  %v2127_v14 = vsel %vm794_vm0, %v6296_v17, 0  ;;  %v6297_v34 = vld [vmem:[#allocation12_spill] sm:$0xff]  ;;  %v6308_v7 = vld [vmem:[#allocation11_spill] sm:$0xff]  ;;  %v6310_v43 = vld [vmem:[#allocation17_spill] sm:$0xff] }
  0x76   : > { %v1374_v53 = vsel %vm5071_vm7, %v1372_v0, %v1373_v25  ;;  %4287 = vmatpush3.bf16.msra.mxu1 %v2127_v14  ;;  %v5308_v6 = vcombine.low %v301_v21, %v302_v42  ;;  %v2561_v51 = vsel %vm794_vm0, %v3726_v20, 0  ;;  %v2333_v26 = vsel %vm794_vm0, %v5176_v8, 0  ;;  %v6306_v8 = vld [vmem:[#allocation6_spill] sm:$0xff]  ;;  %v6307_v28 = vld [vmem:[#allocation8_spill] sm:$0xff]  ;;  %v6311_v19 = vld [vmem:[#allocation21_spill] sm:$0xff] }
  0x77   : > { %v5263_v18 = vcombine.low %v1371_v5, %v1374_v53  ;;  %v1378_v11 = vsel %vm5071_vm7, %v3619_v30, %v1377_v29  ;;  %v1379_v59 = vrot.slane %v1377_v29, 4  ;;  %4465 = vmatprep.subr.msk.bf16.mxu1 %vm794_vm0, %v3726_v20  ;;  %v1883_v13 = vshrl.u32 %v301_v21, 16  ;;  %v6312_v30 = vld [vmem:[#allocation26_spill] sm:$0xff]  ;;  %v6313_v47 = vld [vmem:[#allocation31_spill] sm:$0xff] }
  0x78   : > { %v1886_v9 = vshll.u32 %v301_v21, 16  ;;  %v1896_v25 = vshrl.u32 %v302_v42, 16  ;;  %v1892_v5 = vshll.u32 %v302_v42, 16  ;;  %v2113_v0 = vrot.slane %v302_v42, 5  ;;  %v303_v29 = vld [vmem:[%s4613_s10 + $0xc8] sm:$0x1] }
  0x79   : > { %v1381_v40 = vsel %vm5071_vm7, %v1379_v59, %v1380_v33  ;;  %4195 = vmatmul.mubr.msk.bf16.gmra.mxu0 %vm745_vm3, %v5158_v48  ;;  %4233 = vmatmul.mubr.msk.bf16.gmra.mxu1 %vm745_vm3, %v6297_v34  ;;  %v1885_v33 = vrot.slane %v1883_v13, 4  ;;  %v3689_v59 = vrot.slane %v301_v21, 9  ;;  %v2116_v14 = vrot.slane %v303_v29, 5 }
  0x7a   : > { %v5276_v52 = vcombine.low %v1378_v11, %v1381_v40  ;;  %4198 = vmatprep.mubr.msk.bf16.mxu0 %vm745_vm3, %v5168_v38  ;;  %4236 = vmatprep.mubr.msk.bf16.mxu1 %vm745_vm3, %v6298_v2  ;;  %v1888_v53 = vrot.slane %v1886_v9, 5  ;;  %v1898_v20 = vrot.slane %v1896_v25, 4  ;;  %v1894_v11 = vrot.slane %v1892_v5, 5  ;;  %v6314_v40 = vld [vmem:[#allocation35_spill] sm:$0xff] }
  0x7b   : > { %v2115_v17 = vrot.slane %v2113_v0, 4  ;;  %v1902_v42 = vshll.u32 %v303_v29, 16  ;;  %v2114_v21 = vsel %vm5071_vm7, %v3689_v59, %v2113_v0 }
  0x7d   : > { %v1904_v5 = vrot.slane %v1902_v42, 5 }
  0x81   : > { %4199 = vmatmul.mubr.msk.bf16.gmra.mxu0 %vm745_vm3, %v5196_v63  ;;  %4237 = vmatmul.mubr.msk.bf16.gmra.mxu1 %vm745_vm3, %v6299_v23 }
  0x82   : > { %4202 = vmatprep.mubr.msk.bf16.mxu0 %vm745_vm3, %v5204_v55  ;;  %4240 = vmatprep.mubr.msk.bf16.mxu1 %vm745_vm3, %v6300_v35 }
  0x89   : > { %4203 = vmatmul.mubr.msk.bf16.gmra.mxu0 %vm745_vm3, %v5210_v16  ;;  %4241 = vmatmul.mubr.msk.bf16.gmra.mxu1 %vm745_vm3, %v6301_v37 }
  0x8a   : > { %4206 = vmatprep.mubr.msk.bf16.mxu0 %vm745_vm3, %v5220_v45  ;;  %4244 = vmatprep.mubr.msk.bf16.mxu1 %vm745_vm3, %v6302_v39 }
  0x91   : > { %4207 = vmatmul.mubr.msk.bf16.gmra.mxu0 %vm745_vm3, %v5242_v12  ;;  %4245 = vmatmul.mubr.msk.bf16.gmra.mxu1 %vm745_vm3, %v5044_v56 }
  0x92   : > { %4210 = vmatprep.mubr.msk.bf16.mxu0 %vm745_vm3, %v5248_v44  ;;  %4248 = vmatprep.mubr.msk.bf16.mxu1 %vm745_vm3, %v5064_v57 }
  0x99   : > { %4211 = vmatmul.mubr.msk.bf16.gmra.mxu0 %vm745_vm3, %v5254_v4  ;;  %4249 = vmatmul.mubr.msk.bf16.gmra.mxu1 %vm745_vm3, %v5308_v6 }
  0x9a   : > { %4214 = vmatprep.mubr.msk.bf16.mxu0 %vm745_vm3, %v5263_v18  ;;  %4288 = vmatprep.mubr.msk.bf16.mxu1 %vm745_vm3, %v5109_v41  ;;  %v5332_v41 = vld [vmem:[%s6180_s1 + $0x10] sm:$0x3] }
  0xa1   : > { %4215 = vmatmul.mubr.msk.bf16.gmra.mxu0 %vm745_vm3, %v5276_v52  ;;  %4289 = vmatmul.mubr.msk.bf16.vlgmr.msra.gmra.mxu1 %vm745_vm3, %v5129_v49 }
  0xa2   : > { %4254 = vmatprep.mubr.msk.bf16.mxu0 %vm745_vm3, %v6303_v22  ;;  %4292 = vmatprep.mubr.msk.bf16.mxu1 %vm745_vm3, %v5146_v24  ;;  %v1899_v22 = vor.u32 %v1898_v20, %v1894_v11 }
  0xa3   : > { %4355 = vmatpush3.bf16.msra.mxu1 %v2561_v51  ;;  %v1889_v51 = vor.u32 %v1888_v53, %v1885_v33 }
  0xa4   : > { %v1900_v25 = vrot.slane %v1899_v22, 4 }
  0xa5   : > { %v1890_v9 = vrot.slane %v1889_v51, 4 }
  0xa6   : > { %v1905_v29 = vsel %vm4660_vm4, %v1900_v25, %v1904_v5 }
  0xa7   : > { %v1895_v0 = vsel %vm4660_vm4, %v1890_v9, %v1894_v11 }
  0xa8   : > { %v5403_v53 = vcombine.low %v1895_v0, %v1905_v29 }
  0xa9   : > { %4255 = vmatmul.mubr.msk.bf16.vlgmr.msra.gmra.mxu0 %vm745_vm3, %v6304_v50  ;;  %4293 = vmatmul.mubr.msk.bf16.gmra.mxu1 %vm745_vm3, %v5152_v31 }
  0xaa   : > { %4321 = vmatpush3.bf16.msra.mxu0 %v2333_v26  ;;  %4258 = vmatprep.mubr.msk.bf16.mxu0 %vm745_vm3, %v6305_v10  ;;  %v2117_v26 = vsel %vm5071_vm7, %v2115_v17, %v2116_v14 }
  0xab   : > { %4296 = vmatprep.mubr.msk.bf16.mxu1 %vm745_vm3, %v5158_v48  ;;  %4466 = vmatprep.subr.msk.bf16.mxu0 %vm794_vm0, %v5332_v41  ;;  %v5389_v13 = vcombine.low %v2114_v21, %v2117_v26 }
  0xad   : > { %6315 = vst [vmem:[#allocation5_spill] sm:$0xff] %v5389_v13 }
  0xb1   : > { %4259 = vmatmul.mubr.msk.bf16.gmra.mxu0 %vm745_vm3, %v6306_v8  ;;  %4297 = vmatmul.mubr.msk.bf16.gmra.mxu1 %vm745_vm3, %v5168_v38 }
  0xb2   : > { %4262 = vmatprep.mubr.msk.bf16.mxu0 %vm745_vm3, %v6307_v28  ;;  %4300 = vmatprep.mubr.msk.bf16.mxu1 %vm745_vm3, %v5196_v63 }
  0xb9   : > { %4263 = vmatmul.mubr.msk.bf16.gmra.mxu0 %vm745_vm3, %v6308_v7  ;;  %4301 = vmatmul.mubr.msk.bf16.gmra.mxu1 %vm745_vm3, %v5204_v55 }
  0xba   : > { %4266 = vmatprep.mubr.msk.bf16.mxu0 %vm745_vm3, %v6309_v58  ;;  %4304 = vmatprep.mubr.msk.bf16.mxu1 %vm745_vm3, %v5210_v16 }
  0xc1   : > { %4267 = vmatmul.mubr.msk.bf16.gmra.mxu0 %vm745_vm3, %v6310_v43  ;;  %4305 = vmatmul.mubr.msk.bf16.gmra.mxu1 %vm745_vm3, %v5220_v45 }
  0xc2   : > { %4270 = vmatprep.mubr.msk.bf16.mxu0 %vm745_vm3, %v6311_v19  ;;  %4308 = vmatprep.mubr.msk.bf16.mxu1 %vm745_vm3, %v5242_v12 }
  0xc9   : > { %4271 = vmatmul.mubr.msk.bf16.gmra.mxu0 %vm745_vm3, %v6312_v30  ;;  %4309 = vmatmul.mubr.msk.bf16.gmra.mxu1 %vm745_vm3, %v5248_v44 }
  0xca   : > { %4274 = vmatprep.mubr.msk.bf16.mxu0 %vm745_vm3, %v6313_v47  ;;  %4312 = vmatprep.mubr.msk.bf16.mxu1 %vm745_vm3, %v5254_v4 }
  0xd1   : > { %4275 = vmatmul.mubr.msk.bf16.gmra.mxu0 %vm745_vm3, %v6314_v40  ;;  %4313 = vmatmul.mubr.msk.bf16.gmra.mxu1 %vm745_vm3, %v5263_v18 }
  0xd2   : > { %4278 = vmatprep.mubr.msk.bf16.mxu0 %vm745_vm3, %v5052_v54  ;;  %4316 = vmatprep.mubr.msk.bf16.mxu1 %vm745_vm3, %v5276_v52 }
  0xd9   : > { %4279 = vmatmul.mubr.msk.bf16.gmra.mxu0 %vm745_vm3, %v5087_v61  ;;  %4317 = vmatmul.mubr.msk.bf16.gmra.mxu1 %vm745_vm3, %v5389_v13 }
  0xda   : > { %4282 = vmatprep.mubr.msk.bf16.mxu0 %vm745_vm3, %v5115_v46  ;;  %4356 = vmatprep.mubr.msk.bf16.mxu1 %vm745_vm3, %v6304_v50  ;;  %v4154_v33 = vpop.f32.mrf.mxu1 }
  0xdc   : > { %v1124_v20 = vpop.f32.mrf.mxu1 }
  0xde   : > { %v4155_v59 = vpop.f32.mrf.mxu1 }
  0xe0   : > { %v1127_v14 = vpop.f32.mrf.mxu1 }
  0xe1   : > { %4283 = vmatmul.mubr.msk.bf16.gmra.mxu0 %vm745_vm3, %v5403_v53  ;;  %v4120_v17 = vpop.f32.mrf.mxu0  ;;  %4357 = vmatmul.mubr.msk.bf16.vlgmr.msra.gmra.mxu1 %vm745_vm3, %v6305_v10  ;;  %v2773_v10 = vsel %vm794_vm0, %v5332_v41, 0 }
  0xe2   : > { %4322 = vmatprep.mubr.msk.bf16.mxu0 %vm745_vm3, %v4698_v3  ;;  %v5411_v11 = vadd.f32 %v4154_v33, %v4120_v17  ;;  %4360 = vmatprep.mubr.msk.bf16.mxu1 %vm745_vm3, %v6306_v8 }
  0xe3   : > { %v832_v50 = vpop.f32.mrf.mxu0  ;;  %v4158_v51 = vpop.f32.mrf.mxu1 }
  0xe4   : > { %v5415_v22 = vadd.f32 %v1124_v20, %v832_v50 }
  0xe5   : > { %v4121_v42 = vpop.f32.mrf.mxu0  ;;  %v1140_v21 = vpop.f32.mrf.mxu1 }
  0xe6   : > { %v5417_v26 = vadd.f32 %v4155_v59, %v4121_v42 }
  0xe7   : > { %v835_v9 = vpop.f32.mrf.mxu0  ;;  %v4159_v25 = vpop.f32.mrf.mxu1 }
  0xe8   : > { %v5421_v5 = vadd.f32 %v1127_v14, %v835_v9 }
  0xe9   : > { %4323 = vmatmul.mubr.msk.bf16.vlgmr.msra.gmra.mxu0 %vm745_vm3, %v4724_v32  ;;  %4361 = vmatmul.mubr.msk.bf16.gmra.mxu1 %vm745_vm3, %v6307_v28  ;;  %v1143_v3 = vpop.f32.mrf.mxu1 }
  0xea   : > { %4389 = vmatpush3.bf16.msra.mxu0 %v2773_v10  ;;  %4326 = vmatprep.mubr.msk.bf16.mxu0 %vm745_vm3, %v4753_v62 }
  0xeb   : > { %v4124_v8 = vpop.f32.mrf.mxu0  ;;  %4364 = vmatprep.mubr.msk.bf16.mxu1 %vm745_vm3, %v6308_v7 }
  0xec   : > { %v5431_v41 = vadd.f32 %v4158_v51, %v4124_v8 }
  0xed   : > { %v848_v0 = vpop.f32.mrf.mxu0  ;;  %v4162_v29 = vpop.f32.mrf.mxu1 }
  0xee   : > { %v5433_v33 = vadd.f32 %v1140_v21, %v848_v0  ;;  %v5466_v0 = vld [vmem:[%s4613_s10 + $0xcc] sm:$0xf] }
  0xef   : > { %v4125_v20 = vpop.f32.mrf.mxu0  ;;  %v1156_v32 = vpop.f32.mrf.mxu1 }
  0xf0   : > { %v5435_v59 = vadd.f32 %v4159_v25, %v4125_v20  ;;  %v5469_v20 = vld [vmem:[%s4613_s10 + $0xd0] sm:$0xf] }
  0xf1   : > { %4327 = vmatmul.mubr.msk.bf16.gmra.mxu0 %vm745_vm3, %v6281_v27  ;;  %v851_v28 = vpop.f32.mrf.mxu0  ;;  %4365 = vmatmul.mubr.msk.bf16.gmra.mxu1 %vm745_vm3, %v6309_v58  ;;  %v4163_v62 = vpop.f32.mrf.mxu1 }
  0xf2   : > { %v5441_v17 = vadd.f32 %v1143_v3, %v851_v28  ;;  %4330 = vmatprep.mubr.msk.bf16.mxu0 %vm745_vm3, %v6292_v1  ;;  %4368 = vmatprep.mubr.msk.bf16.mxu1 %vm745_vm3, %v6310_v43 }
  0xf3   : > { %v1159_v14 = vpop.f32.mrf.mxu1 }
  0xf4   : > { %v4128_v7 = vpop.f32.mrf.mxu0 }
  0xf5   : > { %v5447_v50 = vadd.f32 %v4162_v29, %v4128_v7  ;;  %v4166_v27 = vpop.f32.mrf.mxu1  ;;  %v2538_v7 = vshll.u32 %v5469_v20, 16 }
  0xf6   : > { %v864_v51 = vpop.f32.mrf.mxu0 }
  0xf7   : > { %v5449_v42 = vadd.f32 %v1156_v32, %v864_v51  ;;  %v1172_v58 = vpop.f32.mrf.mxu1 }
  0xf8   : > { %v4129_v21 = vpop.f32.mrf.mxu0 }
  0xf9   : > { %v5451_v10 = vadd.f32 %v4163_v62, %v4129_v21  ;;  %4331 = vmatmul.mubr.msk.bf16.gmra.mxu0 %vm745_vm3, %v6294_v60  ;;  %4369 = vmatmul.mubr.msk.bf16.gmra.mxu1 %vm745_vm3, %v6311_v19  ;;  %v4167_v43 = vpop.f32.mrf.mxu1  ;;  %v2532_v62 = vshll.u32 %v5466_v0, 16 }
  0xfa   : > { %v867_v1 = vpop.f32.mrf.mxu0  ;;  %4334 = vmatprep.mubr.msk.bf16.mxu0 %vm745_vm3, %v6297_v34  ;;  %4372 = vmatprep.mubr.msk.bf16.mxu1 %vm745_vm3, %v6312_v30  ;;  %v2529_v30 = vshrl.u32 %v5466_v0, 16 }
  0xfb   : > { %v5457_v9 = vadd.f32 %v1159_v14, %v867_v1  ;;  %v1175_v25 = vpop.f32.mrf.mxu1 }
  0xfd   : > { %v4132_v3 = vpop.f32.mrf.mxu0 }
  0xfe   : > { %v5463_v8 = vadd.f32 %v4166_v27, %v4132_v3 }
  0xff   : > { %v880_v60 = vpop.f32.mrf.mxu0  ;;  %v4170_v29 = vpop.f32.mrf.mxu1 }
 0x100   : > { %v5471_v19 = vadd.f32 %v1172_v58, %v880_v60  ;;  %v2531_v58 = vrot.slane %v2529_v30, 4 }
 0x101   : > { %4335 = vmatmul.mubr.msk.bf16.gmra.mxu0 %vm745_vm3, %v6298_v2  ;;  %v4133_v32 = vpop.f32.mrf.mxu0  ;;  %v1188_v34 = vpop.f32.mrf.mxu1  ;;  %4373 = vmatmul.mubr.msk.bf16.gmra.mxu1 %vm745_vm3, %v6313_v47  ;;  %v2542_v2 = vshrl.u32 %v5469_v20, 16 }
 0x102   : > { %v5478_v28 = vadd.f32 %v4167_v43, %v4133_v32  ;;  %4338 = vmatprep.mubr.msk.bf16.mxu0 %vm745_vm3, %v6299_v23  ;;  %4376 = vmatprep.mubr.msk.bf16.mxu1 %vm745_vm3, %v6314_v40  ;;  %v2534_v23 = vrot.slane %v2532_v62, 5  ;;  %v2540_v43 = vrot.slane %v2538_v7, 5  ;;  %v5494_v32 = vld [vmem:[%s4613_s10 + $0xd4] sm:$0x1] }
 0x103   : > { %v883_v14 = vpop.f32.mrf.mxu0  ;;  %v4171_v51 = vpop.f32.mrf.mxu1  ;;  %v2544_v40 = vrot.slane %v2542_v2, 4 }
 0x104   : > { %v5487_v47 = vadd.f32 %v1175_v25, %v883_v14 }
 0x105   : > { %v5489_v21 = vpop.f32.mrf.mxu1  ;;  %v2545_v62 = vor.u32 %v2544_v40, %v2540_v43 }
 0x106   : > { %v4136_v27 = vpop.f32.mrf.mxu0 }
 0x107   : > { %v5491_v1 = vadd.f32 %v4170_v29, %v4136_v27  ;;  %v4174_v60 = vpop.f32.mrf.mxu1  ;;  %v2535_v29 = vor.u32 %v2534_v23, %v2531_v58 }
 0x108   : > { %v896_v3 = vpop.f32.mrf.mxu0 }
 0x109   : > { %v5496_v13 = vadd.f32 %v1188_v34, %v896_v3  ;;  %4339 = vmatmul.mubr.msk.bf16.gmra.mxu0 %vm745_vm3, %v6300_v35  ;;  %v1204_v14 = vpop.f32.mrf.mxu1  ;;  %4377 = vmatmul.mubr.msk.bf16.gmra.mxu1 %vm745_vm3, %v5052_v54  ;;  %v2548_v34 = vshll.u32 %v5494_v32, 16  ;;  %v2536_v27 = vrot.slane %v2535_v29, 4  ;;  %v2546_v3 = vrot.slane %v2545_v62, 4 }
 0x10a   : > { %v4137_v25 = vpop.f32.mrf.mxu0  ;;  %4342 = vmatprep.mubr.msk.bf16.mxu0 %vm745_vm3, %v6301_v37  ;;  %4380 = vmatprep.mubr.msk.bf16.mxu1 %vm745_vm3, %v5087_v61 }
 0x10b   : > { %v5502_v30 = vadd.f32 %v4171_v51, %v4137_v25  ;;  %v4175_v35 = vpop.f32.mrf.mxu1  ;;  %v2550_v54 = vrot.slane %v2548_v34, 5  ;;  %v2541_v23 = vsel %vm4660_vm4, %v2536_v27, %v2540_v43 }
 0x10c   : > { %v5509_v2 = vpop.f32.mrf.mxu0 }
 0x10d   : > { %v5511_v7 = vpop.f32.mrf.mxu1  ;;  %v2551_v40 = vsel %vm4660_vm4, %v2546_v3, %v2550_v54 }
 0x10f   : > { %v4140_v51 = vpop.f32.mrf.mxu0 }
 0x110   : > { %v5513_v25 = vadd.f32 %v4174_v60, %v4140_v51 }
 0x111   : > { %4343 = vmatmul.mubr.msk.bf16.gmra.mxu0 %vm745_vm3, %v6302_v39  ;;  %v912_v37 = vpop.f32.mrf.mxu0  ;;  %v4178_v61 = vpop.f32.mrf.mxu1  ;;  %4381 = vmatmul.mubr.msk.bf16.gmra.mxu1 %vm745_vm3, %v5115_v46 }
 0x112   : > { %v5519_v58 = vadd.f32 %v1204_v14, %v912_v37  ;;  %4346 = vmatprep.mubr.msk.bf16.mxu0 %vm745_vm3, %v5044_v56  ;;  %4384 = vmatprep.mubr.msk.bf16.mxu1 %vm745_vm3, %v5403_v53  ;;  %v3727_v14 = vcombine.low %v2541_v23, %v2551_v40  ;;  %v3709_v37 = vcombine.low %v5466_v0, %v5469_v20 }
 0x113   : > { %v4141_v39 = vpop.f32.mrf.mxu0  ;;  %v1220_v60 = vpop.f32.mrf.mxu1 }
 0x114   : > { %v5529_v29 = vadd.f32 %v4175_v35, %v4141_v39 }
 0x115   : > { %v5531_v62 = vpop.f32.mrf.mxu0  ;;  %v4179_v46 = vpop.f32.mrf.mxu1 }
 0x117   : > { %v5533_v51 = vpop.f32.mrf.mxu1 }
 0x118   : > { %v4144_v34 = vpop.f32.mrf.mxu0 }
 0x119   : > { %v5535_v56 = vadd.f32 %v4178_v61, %v4144_v34  ;;  %4347 = vmatmul.mubr.msk.bf16.gmra.mxu0 %vm745_vm3, %v5064_v57  ;;  %v4182_v43 = vpop.f32.mrf.mxu1  ;;  %4385 = vmatmul.mubr.msk.bf16.gmra.mxu1 %vm745_vm3, %v3727_v14 }
 0x11a   : > { %v928_v53 = vpop.f32.mrf.mxu0  ;;  %4350 = vmatprep.mubr.msk.bf16.mxu0 %vm745_vm3, %v5308_v6 }
 0x11b   : > { %v5540_v36 = vadd.f32 %v1220_v60, %v928_v53  ;;  %v1236_v27 = vpop.f32.mrf.mxu1 }
 0x11c   : > { %v4145_v35 = vpop.f32.mrf.mxu0 }
 0x11d   : > { %v5544_v3 = vadd.f32 %v4179_v46, %v4145_v35  ;;  %v4183_v61 = vpop.f32.mrf.mxu1 }
 0x11e   : > { %v5546_v54 = vpop.f32.mrf.mxu0 }
 0x11f   : > { %6316 = vst [vmem:[#allocation15_spill] sm:$0xff] %v5544_v3  ;;  %v5550_v57 = vpop.f32.mrf.mxu1 }
 0x120   : > { %6317 = vst [vmem:[#allocation16_spill] sm:$0xff] %v5550_v57 }
 0x121   : > { %v4148_v23 = vpop.f32.mrf.mxu0  ;;  %4351 = vmatmul.mubr.msk.bf16.gmra.mxu0 %vm745_vm3, %v3709_v37  ;;  %v4222_v40 = vpop.f32.mrf.mxu1 }
 0x122   : > { %v5553_v39 = vadd.f32 %v4182_v43, %v4148_v23  ;;  %4390 = vmatprep.mubr.msk.bf16.mxu0 %vm745_vm3, %v5129_v49 }
 0x123   : > { %v944_v6 = vpop.f32.mrf.mxu0  ;;  %v1723_v60 = vpop.f32.mrf.mxu1 }
 0x124   : > { %v5557_v46 = vadd.f32 %v1236_v27, %v944_v6 }
 0x125   : > { %v4149_v14 = vpop.f32.mrf.mxu0  ;;  %v4223_v34 = vpop.f32.mrf.mxu1 }
 0x126   : > { %v5559_v53 = vadd.f32 %v4183_v61, %v4149_v14 }
 0x127   : > { %v5561_v35 = vpop.f32.mrf.mxu0  ;;  %v5563_v57 = vpop.f32.mrf.mxu1 }
 0x128   : > { %6318 = vst [vmem:[#allocation18_spill] sm:$0xff] %v5559_v53  ;;  %6319 = vst [vmem:[#allocation20_spill] sm:$0xff] %v5561_v35 }
 0x129   : > { %6320 = vst [vmem:[#allocation22_spill] sm:$0xff] %v5563_v57  ;;  %v4188_v3 = vpop.f32.mrf.mxu0  ;;  %4391 = vmatmul.mubr.msk.bf16.vlgmr.msra.gmra.mxu0 %vm745_vm3, %v5146_v24  ;;  %v4226_v43 = vpop.f32.mrf.mxu1 }
 0x12a   : > { %v1646_v37 = vadd.f32 %v4188_v3, %v5411_v11  ;;  %4394 = vmatprep.mubr.msk.bf16.mxu0 %vm745_vm3, %v5152_v31 }
 0x12b   : > { %v1517_v49 = vpop.f32.mrf.mxu0  ;;  %v1739_v27 = vpop.f32.mrf.mxu1 }
 0x12c   : > { %v1644_v23 = vadd.f32 %v1517_v49, %v5415_v22  ;;  %v5571_v61 = vadd.f32 %v4222_v40, %v1646_v37 }
 0x12d   : > { %v4189_v6 = vpop.f32.mrf.mxu0  ;;  %v4227_v14 = vpop.f32.mrf.mxu1 }
 0x12e   : > { %v1647_v57 = vadd.f32 %v4189_v6, %v5417_v26  ;;  %v5574_v53 = vadd.f32 %v1723_v60, %v1644_v23 }
 0x12f   : > { %v1520_v35 = vpop.f32.mrf.mxu0  ;;  %v5576_v24 = vpop.f32.mrf.mxu1 }
 0x130   : > { %v5579_v11 = vadd.f32 %v1520_v35, %v5421_v5  ;;  %v5581_v3 = vadd.f32 %v4223_v34, %v1647_v57 }
 0x131   : > { %v4192_v31 = vpop.f32.mrf.mxu0  ;;  %4395 = vmatmul.mubr.msk.bf16.gmra.mxu0 %vm745_vm3, %v5158_v48  ;;  %v4230_v22 = vpop.f32.mrf.mxu1 }
 0x132   : > { %v1650_v40 = vadd.f32 %v4192_v31, %v5431_v41  ;;  %4398 = vmatprep.mubr.msk.bf16.mxu0 %vm745_vm3, %v5168_v38  ;;  %v4510_v38 = vld [vmem:[%s6182_s3 + $0x8] sm:$0xff]  }
 0x133   : > { %v1533_v26 = vpop.f32.mrf.mxu0  ;;  %v1755_v60 = vpop.f32.mrf.mxu1  ;;  %4422 = vmatprep.subr.bf16.mxu1 %v4510_v38 }
 0x134   : > { %v1648_v37 = vadd.f32 %v1533_v26, %v5433_v33  ;;  %v5589_v49 = vadd.f32 %v4226_v43, %v1650_v40  ;;  %4423 = vmatpush3.bf16.msra.mxu1 %v4510_v38 }
 0x135   : > { %v4193_v5 = vpop.f32.mrf.mxu0  ;;  %v4231_v35 = vpop.f32.mrf.mxu1 }
 0x136   : > { %v1651_v57 = vadd.f32 %v4193_v5, %v5435_v59  ;;  %v5592_v34 = vadd.f32 %v1739_v27, %v1648_v37 }
 0x137   : > { %v1536_v23 = vpop.f32.mrf.mxu0  ;;  %v5594_v48 = vpop.f32.mrf.mxu1 }
 0x138   : > { %v5597_v41 = vadd.f32 %v1536_v23, %v5441_v17  ;;  %v5599_v6 = vadd.f32 %v4227_v14, %v1651_v57 }
 0x139   : > { %v4196_v33 = vpop.f32.mrf.mxu0  ;;  %4399 = vmatmul.mubr.msk.bf16.gmra.mxu0 %vm745_vm3, %v5196_v63  ;;  %v4234_v43 = vpop.f32.mrf.mxu1 }
 0x13a   : > { %v1654_v59 = vadd.f32 %v4196_v33, %v5447_v50  ;;  %4402 = vmatprep.mubr.msk.bf16.mxu0 %vm745_vm3, %v5204_v55 }
 0x13b   : > { %v1549_v27 = vpop.f32.mrf.mxu0  ;;  %v1771_v17 = vpop.f32.mrf.mxu1 }
 0x13c   : > { %v1652_v14 = vadd.f32 %v1549_v27, %v5449_v42  ;;  %v5610_v31 = vadd.f32 %v4230_v22, %v1654_v59 }
 0x13d   : > { %v4197_v40 = vpop.f32.mrf.mxu0  ;;  %v4235_v26 = vpop.f32.mrf.mxu1 }
 0x13e   : > { %v1655_v37 = vadd.f32 %v4197_v40, %v5451_v10  ;;  %v5613_v5 = vadd.f32 %v1755_v60, %v1652_v14 }
 0x13f   : > { %v1552_v63 = vpop.f32.mrf.mxu0  ;;  %v5615_v57 = vpop.f32.mrf.mxu1 }
 0x140   : > { %v5618_v50 = vadd.f32 %v1552_v63, %v5457_v9  ;;  %v5620_v55 = vadd.f32 %v4231_v35, %v1655_v37 }
 0x141   : > { %v4200_v23 = vpop.f32.mrf.mxu0  ;;  %4403 = vmatmul.mubr.msk.bf16.gmra.mxu0 %vm745_vm3, %v5210_v16  ;;  %v4238_v42 = vpop.f32.mrf.mxu1 }
 0x142   : > { %v1658_v22 = vadd.f32 %v4200_v23, %v5463_v8  ;;  %4406 = vmatprep.mubr.msk.bf16.mxu0 %vm745_vm3, %v5220_v45 }
 0x143   : > { %v1565_v10 = vpop.f32.mrf.mxu0  ;;  %v1787_v60 = vpop.f32.mrf.mxu1 }
 0x144   : > { %v1656_v38 = vadd.f32 %v1565_v10, %v5471_v19  ;;  %v5628_v33 = vadd.f32 %v4234_v43, %v1658_v22 }
 0x145   : > { %v4201_v9 = vpop.f32.mrf.mxu0  ;;  %v4239_v59 = vpop.f32.mrf.mxu1 }
 0x146   : > { %v1659_v35 = vadd.f32 %v4201_v9, %v5478_v28  ;;  %v5631_v27 = vadd.f32 %v1771_v17, %v1656_v38 }
 0x147   : > { %v1568_v14 = vpop.f32.mrf.mxu0  ;;  %v1790_v16 = vpop.f32.mrf.mxu1 }
 0x148   : > { %v5634_v40 = vadd.f32 %v1568_v14, %v5487_v47  ;;  %v5636_v8 = vadd.f32 %v4235_v26, %v1659_v35  ;;  %v1192_v26 = vadd.f32 %v5489_v21, %v5509_v2 }
 0x149   : > { %v4204_v45 = vpop.f32.mrf.mxu0  ;;  %4407 = vmatmul.mubr.msk.bf16.gmra.mxu0 %vm745_vm3, %v5242_v12  ;;  %v4242_v19 = vpop.f32.mrf.mxu1 }
 0x14a   : > { %v1662_v43 = vadd.f32 %v4204_v45, %v5491_v1  ;;  %4410 = vmatprep.mubr.msk.bf16.mxu0 %vm745_vm3, %v5248_v44 }
 0x14b   : > { %v1581_v28 = vpop.f32.mrf.mxu0  ;;  %v1803_v17 = vpop.f32.mrf.mxu1 }
 0x14c   : > { %v1660_v37 = vadd.f32 %v1581_v28, %v5496_v13  ;;  %v5644_v63 = vadd.f32 %v4238_v42, %v1662_v43  ;;  %v2759_v42 = vrot.slane %v5469_v20, 5  ;;  %v1208_v20 = vadd.f32 %v5511_v7, %v5531_v62 }
 0x14d   : > { %v4205_v47 = vpop.f32.mrf.mxu0  ;;  %v4243_v23 = vpop.f32.mrf.mxu1 }
 0x14e   : > { %v1663_v22 = vadd.f32 %v4205_v47, %v5502_v30  ;;  %v5649_v12 = vadd.f32 %v1787_v60, %v1660_v37  ;;  %v2761_v43 = vrot.slane %v2759_v42, 4 }
 0x14f   : > { %v1584_v10 = vpop.f32.mrf.mxu0  ;;  %v1806_v1 = vpop.f32.mrf.mxu1 }
 0x150   : > { %v1661_v38 = vadd.f32 %v1584_v10, %v1192_v26  ;;  %v5651_v9 = vadd.f32 %v4239_v59, %v1663_v22 }
 0x151   : > { %v4208_v44 = vpop.f32.mrf.mxu0  ;;  %4411 = vmatmul.mubr.msk.bf16.gmra.mxu0 %vm745_vm3, %v5254_v4  ;;  %v4246_v13 = vpop.f32.mrf.mxu1  ;;  %v3744_v4 = vrot.slane %v5466_v0, 9 }
 0x152   : > { %v1666_v35 = vadd.f32 %v4208_v44, %v5513_v25  ;;  %v5657_v14 = vadd.f32 %v1790_v16, %v1661_v38  ;;  %4414 = vmatprep.mubr.msk.bf16.mxu0 %vm745_vm3, %v5263_v18  ;;  %v2762_v18 = vrot.slane %v5494_v32, 5 }
 0x153   : > { %v1597_v21 = vpop.f32.mrf.mxu0  ;;  %v1819_v30 = vpop.f32.mrf.mxu1  ;;  %v2760_v7 = vsel %vm5071_vm7, %v3744_v4, %v2759_v42 }
 0x154   : > { %v1664_v2 = vadd.f32 %v1597_v21, %v5519_v58  ;;  %v5662_v60 = vadd.f32 %v4242_v19, %v1666_v35  ;;  %v4511_v19 = vld [vmem:[%s6182_s3] sm:$0xff]  }
 0x155   : > { %v4209_v59 = vpop.f32.mrf.mxu0  ;;  %v4247_v45 = vpop.f32.mrf.mxu1  ;;  %4424 = vmatprep.subr.bf16.mxu1 %v4511_v19 }
 0x156   : > { %v1667_v25 = vadd.f32 %v4209_v59, %v5529_v29  ;;  %v5668_v16 = vadd.f32 %v1803_v17, %v1664_v2  ;;  %v6321_v17 = vld [vmem:[#allocation5_spill] sm:$0xff]  ;;  %4425 = vmatpush3.bf16.msra.mxu1 %v4511_v19 }
 0x157   : > { %v1600_v28 = vpop.f32.mrf.mxu0  ;;  %v1822_v37 = vpop.f32.mrf.mxu1 }
 0x158   : > { %v1665_v47 = vadd.f32 %v1600_v28, %v1208_v20  ;;  %v5671_v58 = vadd.f32 %v4243_v23, %v1667_v25  ;;  %v2763_v23 = vsel %vm5071_vm7, %v2761_v43, %v2762_v18 }
 0x159   : > { %v4212_v0 = vpop.f32.mrf.mxu0  ;;  %4415 = vmatmul.mubr.msk.bf16.gmra.mxu0 %vm745_vm3, %v5276_v52  ;;  %v4250_v29 = vpop.f32.mrf.mxu1  ;;  %v3746_v44 = vcombine.low %v2760_v7, %v2763_v23 }
 0x15a   : > { %v1670_v62 = vadd.f32 %v4212_v0, %v5535_v56  ;;  %v5681_v32 = vadd.f32 %v1806_v1, %v1665_v47  ;;  %4418 = vmatprep.mubr.msk.bf16.mxu0 %vm745_vm3, %v6321_v17  ;;  %v1224_v56 = vadd.f32 %v5533_v51, %v5546_v54  ;;  %v6322_v1 = vld [vmem:[#allocation15_spill] sm:$0xff]  ;;  %v6323_v47 = vld [vmem:[#allocation20_spill] sm:$0xff]  ;;  %v6325_v0 = vld [vmem:[#allocation18_spill] sm:$0xff] }
 0x15b   : > { %v1613_v26 = vpop.f32.mrf.mxu0  ;;  %v1835_v22 = vpop.f32.mrf.mxu1 }
 0x15c   : > { %v1668_v52 = vadd.f32 %v1613_v26, %v5540_v36  ;;  %v5688_v10 = vadd.f32 %v4246_v13, %v1670_v62 }
 0x15d   : > { %v4213_v38 = vpop.f32.mrf.mxu0  ;;  %v4251_v42 = vpop.f32.mrf.mxu1 }
 0x15e   : > { %v1671_v35 = vadd.f32 %v4213_v38, %v6322_v1  ;;  %v5693_v21 = vadd.f32 %v1819_v30, %v1668_v52 }
 0x15f   : > { %v1616_v15 = vpop.f32.mrf.mxu0  ;;  %v1838_v2 = vpop.f32.mrf.mxu1 }
 0x160   : > { %v1669_v59 = vadd.f32 %v1616_v15, %v1224_v56  ;;  %v5695_v4 = vadd.f32 %v4247_v45, %v1671_v35  ;;  %v6324_v45 = vld [vmem:[#allocation16_spill] sm:$0xff]  ;;  %v6326_v15 = vld [vmem:[#allocation22_spill] sm:$0xff] }
 0x161   : > { %v4216_v43 = vpop.f32.mrf.mxu0  ;;  %4419 = vmatmul.mubr.msk.bf16.gmra.mxu0 %vm745_vm3, %v3746_v44  ;;  %v4290_v36 = vpop.f32.mrf.mxu1  ;;  %v1240_v19 = vadd.f32 %v6324_v45, %v6323_v47 }
 0x162   : > { %v1674_v13 = vadd.f32 %v4216_v43, %v5553_v39  ;;  %v5699_v20 = vadd.f32 %v1822_v37, %v1669_v59  ;;  %v1851_v59 = vadd.f32 %v6326_v15, %v5579_v11 }
 0x163   : > { %v1629_v25 = vpop.f32.mrf.mxu0  ;;  %v2163_v18 = vpop.f32.mrf.mxu1 }
 0x164   : > { %v1672_v51 = vadd.f32 %v1629_v25, %v5557_v46  ;;  %v5702_v54 = vadd.f32 %v4250_v29, %v1674_v13 }
 0x165   : > { %v4217_v30 = vpop.f32.mrf.mxu0  ;;  %v5704_v28 = vpop.f32.mrf.mxu1 }
 0x166   : > { %v1675_v7 = vadd.f32 %v4217_v30, %v6325_v0  ;;  %v5709_v62 = vadd.f32 %v1835_v22, %v1672_v51 }
 0x167   : > { %v1632_v17 = vpop.f32.mrf.mxu0  ;;  %v5711_v39 = vpop.f32.mrf.mxu1 }
 0x168   : > { %v1673_v37 = vadd.f32 %v1632_v17, %v1240_v19  ;;  %v5713_v23 = vadd.f32 %v4251_v42, %v1675_v7 }
 0x169   : > { %v4256_v26 = vpop.f32.mrf.mxu0  ;;  %v4294_v46 = vpop.f32.mrf.mxu1 }
 0x16a   : > { %v5715_v29 = vadd.f32 %v1838_v2, %v1673_v37  ;;  %v2080_v52 = vadd.f32 %v4256_v26, %v5571_v61 }
 0x16b   : > { %v1951_v38 = vpop.f32.mrf.mxu0  ;;  %v2179_v44 = vpop.f32.mrf.mxu1 }
 0x16c   : > { %v2078_v56 = vadd.f32 %v1951_v38, %v5574_v53  ;;  %v5719_v1 = vadd.f32 %v4290_v36, %v2080_v52 }
 0x16d   : > { %v4257_v22 = vpop.f32.mrf.mxu0  ;;  %v5721_v35 = vpop.f32.mrf.mxu1 }
 0x16e   : > { %v5726_v42 = vadd.f32 %v4257_v22, %v5581_v3  ;;  %v5728_v43 = vadd.f32 %v2163_v18, %v2078_v56  ;;  %v1855_v18 = vadd.f32 %v5576_v24, %v5597_v41 }
 0x16f   : > { %v1954_v2 = vpop.f32.mrf.mxu0  ;;  %v5730_v13 = vpop.f32.mrf.mxu1 }
 0x170   : > { %v5732_v61 = vadd.f32 %v1954_v2, %v1851_v59 }
 0x171   : > { %v4260_v25 = vpop.f32.mrf.mxu0  ;;  %v4298_v53 = vpop.f32.mrf.mxu1 }
 0x172   : > { %v2084_v36 = vadd.f32 %v4260_v25, %v5589_v49 }
 0x173   : > { %v1967_v51 = vpop.f32.mrf.mxu0  ;;  %v2195_v30 = vpop.f32.mrf.mxu1 }
 0x174   : > { %v2082_v47 = vadd.f32 %v1967_v51, %v5592_v34  ;;  %v5736_v45 = vadd.f32 %v4294_v46, %v2084_v36 }
 0x175   : > { %v4261_v11 = vpop.f32.mrf.mxu0  ;;  %v5738_v3 = vpop.f32.mrf.mxu1 }
 0x176   : > { %v5743_v19 = vadd.f32 %v4261_v11, %v5599_v6  ;;  %v5745_v0 = vadd.f32 %v2179_v44, %v2082_v47  ;;  %v1859_v6 = vadd.f32 %v5594_v48, %v5618_v50 }
 0x177   : > { %v1970_v7 = vpop.f32.mrf.mxu0  ;;  %v5747_v17 = vpop.f32.mrf.mxu1 }
 0x178   : > { %v5749_v49 = vadd.f32 %v1970_v7, %v1855_v18 }
 0x179   : > { %v4264_v37 = vpop.f32.mrf.mxu0  ;;  %v4302_v34 = vpop.f32.mrf.mxu1 }
 0x17a   : > { %v2088_v26 = vadd.f32 %v4264_v37, %v5610_v31 }
 0x17b   : > { %v1983_v46 = vpop.f32.mrf.mxu0  ;;  %v2211_v52 = vpop.f32.mrf.mxu1 }
 0x17c   : > { %v2086_v38 = vadd.f32 %v1983_v46, %v5613_v5  ;;  %v5753_v56 = vadd.f32 %v4298_v53, %v2088_v26 }
 0x17d   : > { %v4265_v24 = vpop.f32.mrf.mxu0  ;;  %v5755_v41 = vpop.f32.mrf.mxu1 }
 0x17e   : > { %v5760_v44 = vadd.f32 %v4265_v24, %v5620_v55  ;;  %v5762_v22 = vadd.f32 %v2195_v30, %v2086_v38  ;;  %v1863_v55 = vadd.f32 %v5615_v57, %v5634_v40 }
 0x17f   : > { %v1986_v15 = vpop.f32.mrf.mxu0  ;;  %v5764_v59 = vpop.f32.mrf.mxu1 }
 0x180   : > { %v5766_v31 = vadd.f32 %v1986_v15, %v1859_v6 }
 0x181   : > { %v4268_v2 = vpop.f32.mrf.mxu0  ;;  %v4306_v5 = vpop.f32.mrf.mxu1 }
 0x182   : > { %v2092_v25 = vadd.f32 %v4268_v2, %v5628_v33 }
 0x183   : > { %v1999_v53 = vpop.f32.mrf.mxu0  ;;  %v2227_v36 = vpop.f32.mrf.mxu1 }
 0x184   : > { %v2090_v51 = vadd.f32 %v1999_v53, %v5631_v27  ;;  %v5770_v47 = vadd.f32 %v4302_v34, %v2092_v25 }
 0x185   : > { %v4269_v48 = vpop.f32.mrf.mxu0  ;;  %v5772_v50 = vpop.f32.mrf.mxu1 }
 0x186   : > { %v5777_v30 = vadd.f32 %v4269_v48, %v5636_v8  ;;  %v5779_v11 = vadd.f32 %v2211_v52, %v2090_v51 }
 0x187   : > { %v2002_v18 = vpop.f32.mrf.mxu0  ;;  %v5781_v7 = vpop.f32.mrf.mxu1 }
 0x188   : > { %v5783_v33 = vadd.f32 %v2002_v18, %v1863_v55 }
 0x189   : > { %v4272_v37 = vpop.f32.mrf.mxu0  ;;  %v4310_v27 = vpop.f32.mrf.mxu1 }
 0x18a   : > { %v2096_v34 = vadd.f32 %v4272_v37, %v5644_v63 }
 0x18b   : > { %v2015_v26 = vpop.f32.mrf.mxu0  ;;  %v2243_v46 = vpop.f32.mrf.mxu1 }
 0x18c   : > { %v2094_v38 = vadd.f32 %v2015_v26, %v5649_v12  ;;  %v5787_v24 = vadd.f32 %v4306_v5, %v2096_v34 }
 0x18d   : > { %v4273_v57 = vpop.f32.mrf.mxu0  ;;  %v5789_v40 = vpop.f32.mrf.mxu1 }
 0x18e   : > { %6327 = vst [vmem:[#allocation24_spill] sm:$0xff] %v5789_v40  ;;  %v5792_v8 = vadd.f32 %v4273_v57, %v5651_v9  ;;  %v5794_v52 = vadd.f32 %v2227_v36, %v2094_v38 }
 0x18f   : > { %v2018_v6 = vpop.f32.mrf.mxu0  ;;  %v5796_v15 = vpop.f32.mrf.mxu1 }
 0x190   : > { %6328 = vst [vmem:[#allocation25_spill] sm:$0xff] %v5796_v15  ;;  %v5799_v2 = vadd.f32 %v2018_v6, %v5657_v14 }
 0x191   : > { %v4276_v63 = vpop.f32.mrf.mxu0  ;;  %v4314_v25 = vpop.f32.mrf.mxu1 }
 0x192   : > { %v2100_v12 = vadd.f32 %v4276_v63, %v5662_v60 }
 0x193   : > { %v2031_v5 = vpop.f32.mrf.mxu0  ;;  %v2259_v53 = vpop.f32.mrf.mxu1 }
 0x194   : > { %v2098_v51 = vadd.f32 %v2031_v5, %v5668_v16  ;;  %v5803_v48 = vadd.f32 %v4310_v27, %v2100_v12 }
 0x195   : > { %v4277_v9 = vpop.f32.mrf.mxu0  ;;  %v5805_v55 = vpop.f32.mrf.mxu1 }
 0x196   : > { %6329 = vst [vmem:[#allocation27_spill] sm:$0xff] %v5805_v55  ;;  %v5808_v36 = vadd.f32 %v4277_v9, %v5671_v58  ;;  %v5810_v18 = vadd.f32 %v2243_v46, %v2098_v51 }
 0x197   : > { %v2034_v14 = vpop.f32.mrf.mxu0  ;;  %v5812_v37 = vpop.f32.mrf.mxu1 }
 0x198   : > { %6330 = vst [vmem:[#allocation29_spill] sm:$0xff] %v5808_v36  ;;  %6331 = vst [vmem:[#allocation30_spill] sm:$0xff] %v5812_v37  ;;  %v5815_v34 = vadd.f32 %v2034_v14, %v5681_v32 }
 0x199   : > { %v4280_v60 = vpop.f32.mrf.mxu0  ;;  %v4318_v26 = vpop.f32.mrf.mxu1 }
 0x19a   : > { %6332 = vst [vmem:[#allocation7_spill] sm:$0xff] %v5815_v34  ;;  %v2104_v16 = vadd.f32 %v4280_v60, %v5688_v10 }
 0x19b   : > { %v2047_v27 = vpop.f32.mrf.mxu0  ;;  %v2275_v38 = vpop.f32.mrf.mxu1 }
 0x19c   : > { %v2102_v57 = vadd.f32 %v2047_v27, %v5693_v21  ;;  %v5819_v6 = vadd.f32 %v4314_v25, %v2104_v16 }
 0x19d   : > { %v4281_v58 = vpop.f32.mrf.mxu0  ;;  %v5826_v5 = vpop.f32.mrf.mxu1 }
 0x19e   : > { %v5822_v46 = vadd.f32 %v4281_v58, %v5695_v4  ;;  %v5824_v63 = vadd.f32 %v2259_v53, %v2102_v57  ;;  %6334 = vst [vmem:[#allocation9_spill] sm:$0xff] %v5826_v5 }
 0x19f   : > { %v2050_v12 = vpop.f32.mrf.mxu0  ;;  %v5832_v14 = vpop.f32.mrf.mxu1 }
 0x1a0   : > { %6333 = vst [vmem:[#allocation32_spill] sm:$0xff] %v5822_v46  ;;  %v5829_v32 = vadd.f32 %v2050_v12, %v5699_v20  ;;  %6336 = vst [vmem:[#allocation10_spill] sm:$0xff] %v5832_v14 }
 0x1a1   : > { %v4284_v51 = vpop.f32.mrf.mxu0  ;;  %v5842_v27 = vpop.f32.mrf.mxu1 }
 0x1a2   : > { %6335 = vst [vmem:[#allocation34_spill] sm:$0xff] %v5829_v32  ;;  %v2108_v10 = vadd.f32 %v4284_v51, %v5702_v54 }
 0x1a3   : > { %v2063_v9 = vpop.f32.mrf.mxu0 }
 0x1a4   : > { %v2106_v21 = vadd.f32 %v2063_v9, %v5709_v62  ;;  %v5835_v25 = vadd.f32 %v4318_v26, %v2108_v10  ;;  %v5850_v62 = vpop.f32.mrf.mxu1 }
 0x1a5   : > { %v4285_v4 = vpop.f32.mrf.mxu0 }
 0x1a6   : > { %v5838_v53 = vadd.f32 %v4285_v4, %v5713_v23  ;;  %v5840_v60 = vadd.f32 %v2275_v38, %v2106_v21  ;;  %v5857_v38 = vpop.f32.mrf.mxu1 }
 0x1a7   : > { %v2066_v16 = vpop.f32.mrf.mxu0 }
 0x1a8   : > { %6337 = vst [vmem:[#allocation12_spill] sm:$0xff] %v5838_v53  ;;  %v5845_v20 = vadd.f32 %v2066_v16, %v5715_v29  ;;  %v5862_v29 = vpop.f32.mrf.mxu1 }
 0x1a9   : > { %v4324_v54 = vpop.f32.mrf.mxu0 }
 0x1aa   : > { %6338 = vst [vmem:[#allocation14_spill] sm:$0xff] %v5845_v20  ;;  %v5848_v57 = vadd.f32 %v4324_v54, %v5719_v1  ;;  %v5869_v4 = vpop.f32.mrf.mxu1 }
 0x1ab   : > { %v2369_v58 = vpop.f32.mrf.mxu0 }
 0x1ac   : > { %v5853_v26 = vadd.f32 %v2369_v58, %v5728_v43  ;;  %v5876_v58 = vpop.f32.mrf.mxu1 }
 0x1ad   : > { %v4325_v23 = vpop.f32.mrf.mxu0 }
 0x1af   : > { %v5855_v12 = vpop.f32.mrf.mxu0 }
 0x1b1   : > { %v4328_v51 = vpop.f32.mrf.mxu0 }
 0x1b2   : > { %v5860_v10 = vadd.f32 %v4328_v51, %v5736_v45 }
 0x1b3   : > { %v2385_v9 = vpop.f32.mrf.mxu0 }
 0x1b4   : > { %v5865_v1 = vadd.f32 %v2385_v9, %v5745_v0  ;;  %v5883_v0 = vpop.f32.mrf.mxu1 }
 0x1b5   : > { %v5867_v21 = vpop.f32.mrf.mxu0 }
 0x1b6   : > { %v5890_v53 = vpop.f32.mrf.mxu1 }
 0x1b7   : > { %v5871_v43 = vpop.f32.mrf.mxu0 }
 0x1b9   : > { %v4332_v16 = vpop.f32.mrf.mxu0 }
 0x1ba   : > { %v5874_v54 = vadd.f32 %v4332_v16, %v5753_v56 }
 0x1bb   : > { %v2401_v45 = vpop.f32.mrf.mxu0 }
 0x1bc   : > { %v5879_v51 = vadd.f32 %v2401_v45, %v5762_v22  ;;  %v5897_v22 = vpop.f32.mrf.mxu1 }
 0x1bd   : > { %v5881_v14 = vpop.f32.mrf.mxu0 }
 0x1be   : > { %v5904_v46 = vpop.f32.mrf.mxu1 }
 0x1bf   : > { %v5885_v9 = vpop.f32.mrf.mxu0 }
 0x1c1   : > { %v4336_v20 = vpop.f32.mrf.mxu0 }
 0x1c2   : > { %v5888_v5 = vadd.f32 %v4336_v20, %v5770_v47 }
 0x1c3   : > { %v2417_v56 = vpop.f32.mrf.mxu0 }
 0x1c4   : > { %v5893_v16 = vadd.f32 %v2417_v56, %v5779_v11  ;;  %v5911_v11 = vpop.f32.mrf.mxu1 }
 0x1c5   : > { %v5895_v37 = vpop.f32.mrf.mxu0 }
 0x1c6   : > { %v5918_v36 = vpop.f32.mrf.mxu1 }
 0x1c7   : > { %v5899_v45 = vpop.f32.mrf.mxu0 }
 0x1c9   : > { %v4340_v32 = vpop.f32.mrf.mxu0 }
 0x1ca   : > { %v5902_v55 = vadd.f32 %v4340_v32, %v5787_v24 }
 0x1cb   : > { %v2433_v47 = vpop.f32.mrf.mxu0 }
 0x1cc   : > { %6339 = vst [vmem:[#allocation19_spill] sm:$0xff] %v5902_v55  ;;  %v5907_v20 = vadd.f32 %v2433_v47, %v5794_v52  ;;  %v5925_v52 = vpop.f32.mrf.mxu1 }
 0x1cd   : > { %v5909_v15 = vpop.f32.mrf.mxu0 }
 0x1ce   : > { %6340 = vst [vmem:[#allocation23_spill] sm:$0xff] %v5907_v20  ;;  %6341 = vst [vmem:[#allocation28_spill] sm:$0xff] %v5909_v15 }
 0x1cf   : > { %v5913_v56 = vpop.f32.mrf.mxu0 }
 0x1d0   : > { %6342 = vst [vmem:[#allocation33_spill] sm:$0xff] %v5913_v56  ;;  %v5932_v56 = vpop.f32.mrf.mxu1 }
 0x1d1   : > { %v4344_v34 = vpop.f32.mrf.mxu0 }
 0x1d2   : > { %v5916_v40 = vadd.f32 %v4344_v34, %v5803_v48 }
 0x1d3   : > { %v2449_v24 = vpop.f32.mrf.mxu0 }
 0x1d4   : > { %6343 = vst [vmem:[#allocation2_spill] sm:$0xff] %v5916_v40  ;;  %v5921_v32 = vadd.f32 %v2449_v24, %v5810_v18  ;;  %v5939_v18 = vpop.f32.mrf.mxu1 }
 0x1d5   : > { %v5923_v55 = vpop.f32.mrf.mxu0 }
 0x1d6   : > { %6344 = vst [vmem:[#allocation3_spill] sm:$0xff] %v5921_v32  ;;  %6345 = vst [vmem:[#allocation4_spill] sm:$0xff] %v5923_v55 }
 0x1d7   : > { %v5927_v47 = vpop.f32.mrf.mxu0 }
 0x1d8   : > { %6346 = vst [vmem:[#allocation6_spill] sm:$0xff] %v5927_v47  ;;  %v5946_v47 = vpop.f32.mrf.mxu1 }
 0x1d9   : > { %v4348_v20 = vpop.f32.mrf.mxu0 }
 0x1da   : > { %v5930_v15 = vadd.f32 %v4348_v20, %v5819_v6 }
 0x1db   : > { %v2465_v48 = vpop.f32.mrf.mxu0 }
 0x1dc   : > { %6347 = vst [vmem:[#allocation8_spill] sm:$0xff] %v5930_v15  ;;  %v5935_v34 = vadd.f32 %v2465_v48, %v5824_v63  ;;  %v2293_v63 = vadd.f32 %v5704_v28, %v5726_v42  ;;  %v5955_v48 = vpop.f32.mrf.mxu1  ;;  %v5971_v28 = vld [vmem:[%s6181_s2] ss:$0 sm:$0xff] }
 0x1dd   : > { %v5937_v40 = vpop.f32.mrf.mxu0 }
 0x1de   : > { %6348 = vst [vmem:[#allocation11_spill] sm:$0xff] %v5935_v34 }
 0x1df   : > { %v5941_v24 = vpop.f32.mrf.mxu0 }
 0x1e0   : > { %6349 = vst [vmem:[#allocation13_spill] sm:$0xff] %v5941_v24  ;;  %v2291_v24 = vadd.f32 %v5711_v39, %v5732_v61 }
 0x1e1   : > { %v4352_v32 = vpop.f32.mrf.mxu0 }
 0x1e2   : > { %v5944_v55 = vadd.f32 %v4352_v32, %v5835_v25  ;;  %v2726_v25 = vadd.f32 %v5842_v27, %v5848_v57  ;;  %v2499_v32 = vadd.f32 %v4325_v23, %v2293_v63  ;;  %v2297_v27 = vadd.f32 %v5721_v35, %v5743_v19 }
 0x1e3   : > { %v2481_v6 = vpop.f32.mrf.mxu0  ;;  %v2295_v23 = vadd.f32 %v5730_v13, %v5749_v49 }
 0x1e4   : > { %6350 = vst [vmem:[#allocation17_spill] sm:$0xff] %v5944_v55  ;;  %v5949_v20 = vadd.f32 %v2481_v6, %v5840_v60  ;;  %v2724_v60 = vadd.f32 %v5850_v62, %v5853_v26  ;;  %v2497_v6 = vadd.f32 %v5855_v12, %v2291_v24  ;;  %v2727_v39 = vadd.f32 %v5857_v38, %v2499_v32 }
 0x1e5   : > { %v5951_v15 = vpop.f32.mrf.mxu0  ;;  %v2503_v12 = vadd.f32 %v5867_v21, %v2297_v27  ;;  %v2730_v38 = vadd.f32 %v5869_v4, %v5860_v10 }
 0x1e6   : > { %6351 = vst [vmem:[#allocation21_spill] sm:$0xff] %v5949_v20  ;;  %6352 = vst [vmem:[#allocation26_spill] sm:$0xff] %v5951_v15  ;;  %v5966_v15 = vpop.f32.mrf.mxu1  ;;  %v2725_v62 = vadd.f32 %v5862_v29, %v2497_v6  ;;  %v2728_v29 = vadd.f32 %v5876_v58, %v5865_v1  ;;  %v2301_v1 = vadd.f32 %v5738_v3, %v5760_v44 }
 0x1e7   : > { %v5957_v34 = vpop.f32.mrf.mxu0  ;;  %v2731_v6 = vadd.f32 %v5883_v0, %v2503_v12  ;;  %v2299_v0 = vadd.f32 %v5747_v17, %v5766_v31 }
 0x1e8   : > { %v5981_v24 = vpop.f32.mrf.mxu1 }
 0x1e9   : > { %v4392_v55 = vpop.f32.mrf.mxu0  ;;  %v2505_v17 = vadd.f32 %v5885_v9, %v2299_v0 }
 0x1ea   : > { %v2938_v20 = vadd.f32 %v4392_v55, %v2726_v25 }
 0x1eb   : > { %v2809_v42 = vpop.f32.mrf.mxu0  ;;  %v2733_v9 = vadd.f32 %v5918_v36, %v2505_v17 }
 0x1ec   : > { %v2936_v61 = vadd.f32 %v2809_v42, %v2724_v60  ;;  %v2977_v26 = vadd.f32 %v5971_v28, %v2938_v20  ;;  %v2501_v20 = vadd.f32 %v5871_v43, %v2295_v23  ;;  %v5992_v42 = vpop.f32.mrf.mxu1 }
 0x1ed   : > { %v4393_v57 = vpop.f32.mrf.mxu0 }
 0x1ee   : > { %v2939_v55 = vadd.f32 %v4393_v57, %v2727_v39  ;;  %v2975_v25 = vadd.f32 %v5971_v28, %v2936_v61  ;;  %v3009_v13 = vmax.f32 %v2977_v26, 0.0  ;;  %v2729_v43 = vadd.f32 %v5890_v53, %v2501_v20  ;;  %v6001_v23 = vpop.f32.mrf.mxu1 }
 0x1ef   : > { %v2812_v63 = vpop.f32.mrf.mxu0 }
 0x1f0   : > { %v2978_v35 = vadd.f32 %v5971_v28, %v2939_v55  ;;  %v2937_v19 = vadd.f32 %v2812_v63, %v2725_v62  ;;  %v3007_v4 = vmax.f32 %v2975_v25, 0.0  ;;  %v2507_v55 = vadd.f32 %v5881_v14, %v2301_v1 }
 0x1f1   : > { %v4396_v32 = vpop.f32.mrf.mxu0  ;;  %v2734_v63 = vadd.f32 %v5897_v22, %v5874_v54 }
 0x1f2   : > { %v3010_v49 = vmax.f32 %v2978_v35, 0.0  ;;  %v2976_v21 = vadd.f32 %v5971_v28, %v2937_v19  ;;  %v2942_v60 = vadd.f32 %v4396_v32, %v2730_v38  ;;  %v2732_v38 = vadd.f32 %v5904_v46, %v5879_v51  ;;  %v6014_v19 = vpop.f32.mrf.mxu1 }
 0x1f3   : > { %v2825_v10 = vpop.f32.mrf.mxu0  ;;  %v2735_v22 = vadd.f32 %v5911_v11, %v2507_v55  ;;  %v2305_v46 = vadd.f32 %v5755_v41, %v5777_v30  ;;  %v2303_v11 = vadd.f32 %v5764_v59, %v5783_v33 }
 0x1f4   : > { %v3040_v39 = vpack.c.bf16 %v3010_v49, %v3009_v13  ;;  %v3008_v61 = vmax.f32 %v2976_v21, 0.0  ;;  %v2940_v27 = vadd.f32 %v2825_v10, %v2728_v29  ;;  %v2981_v62 = vadd.f32 %v5971_v28, %v2942_v60 }
 0x1f5   : > { %v4397_v58 = vpop.f32.mrf.mxu0  ;;  %v2511_v10 = vadd.f32 %v5895_v37, %v2305_v46  ;;  %v2509_v59 = vadd.f32 %v5899_v45, %v2303_v11 }
 0x1f6   : > { %v3039_v57 = vpack.c.bf16 %v3008_v61, %v3007_v4  ;;  %v2943_v26 = vadd.f32 %v4397_v58, %v2731_v6  ;;  %v2979_v3 = vadd.f32 %v5971_v28, %v2940_v27  ;;  %v3013_v14 = vmax.f32 %v2981_v62, 0.0  ;;  %v6023_v4 = vpop.f32.mrf.mxu1 }
 0x1f7   : > { %v2828_v12 = vpop.f32.mrf.mxu0  ;;  %v2738_v61 = vadd.f32 %v5925_v52, %v5888_v5  ;;  %v2736_v27 = vadd.f32 %v5932_v56, %v5893_v16  ;;  %v2739_v52 = vadd.f32 %v5939_v18, %v2511_v10  ;;  %v2309_v16 = vadd.f32 %v5772_v50, %v5792_v8 }
 0x1f8   : > { %v2982_v44 = vadd.f32 %v5971_v28, %v2943_v26  ;;  %v2941_v53 = vadd.f32 %v2828_v12, %v2729_v43  ;;  %4426 = vmatprep.mubr.msk.bf16.mxu1 %vm3078_vm8, %v3039_v57  ;;  %v3011_v20 = vmax.f32 %v2979_v3, 0.0  ;;  %v6036_v43 = vpop.f32.mrf.mxu1  ;;  %v2737_v56 = vadd.f32 %v5946_v47, %v2509_v59  ;;  %v6355_v47 = vld [vmem:[#allocation23_spill] sm:$0xff] }
 0x1f9   : > { %v4400_v31 = vpop.f32.mrf.mxu0  ;;  %4427 = vmatmul.mubr.msk.bf16.vlgmr.msra.gmra.mxu1 %vm3078_vm8, %v3040_v39  ;;  %v2307_v18 = vadd.f32 %v5781_v7, %v5799_v2 }
 0x1fa   : > { %v3014_v25 = vmax.f32 %v2982_v44, 0.0  ;;  %v2980_v35 = vadd.f32 %v5971_v28, %v2941_v53  ;;  %v2946_v54 = vadd.f32 %v4400_v31, %v2734_v63  ;;  %v6353_v44 = vld [vmem:[#allocation28_spill] sm:$0xff]  ;;  %v6354_v31 = vld [vmem:[#allocation19_spill] sm:$0xff] }
 0x1fb   : > { %v2841_v29 = vpop.f32.mrf.mxu0  ;;  %v2515_v53 = vadd.f32 %v6353_v44, %v2309_v16 }
 0x1fc   : > { %v3042_v32 = vpack.c.bf16 %v3014_v25, %v3013_v14  ;;  %v3012_v13 = vmax.f32 %v2980_v35, 0.0  ;;  %v2944_v49 = vadd.f32 %v2841_v29, %v2732_v38  ;;  %v2985_v60 = vadd.f32 %v5971_v28, %v2946_v54  ;;  %v4382_v38 = vpop.f32.mrf.mxu1  ;;  %v6356_v54 = vld [vmem:[#allocation33_spill] sm:$0xff] }
 0x1fd   : > { %v4401_v51 = vpop.f32.mrf.mxu0  ;;  %v2742_v14 = vadd.f32 %v5955_v48, %v6354_v31  ;;  %v2740_v35 = vadd.f32 %v5966_v15, %v6355_v47  ;;  %v6358_v15 = vld [vmem:[#allocation24_spill] sm:$0xff] }
 0x1fe   : > { %v3041_v21 = vpack.c.bf16 %v3012_v13, %v3011_v20  ;;  %v2947_v6 = vadd.f32 %v4401_v51, %v2735_v22  ;;  %v2983_v41 = vadd.f32 %v5971_v28, %v2944_v49  ;;  %v3017_v37 = vmax.f32 %v2985_v60, 0.0  ;;  %v2693_v13 = vpop.f32.mrf.mxu1  ;;  %v6357_v60 = vld [vmem:[#allocation29_spill] sm:$0xff]  ;;  %v6365_v31 = vld [vmem:[#allocation32_spill] sm:$0xff] }
 0x1ff   : > { %v2844_v39 = vpop.f32.mrf.mxu0  ;;  %v2513_v22 = vadd.f32 %v6356_v54, %v2307_v18  ;;  %v6367_v54 = vld [vmem:[#allocation34_spill] sm:$0xff] }
 0x200   : > { %v2986_v30 = vadd.f32 %v5971_v28, %v2947_v6  ;;  %v2945_v36 = vadd.f32 %v2844_v39, %v2733_v9  ;;  %4430 = vmatprep.mubr.msk.bf16.mxu1 %vm3078_vm8, %v3041_v21  ;;  %v3015_v62 = vmax.f32 %v2983_v41, 0.0  ;;  %v2313_v6 = vadd.f32 %v6358_v15, %v6357_v60 }
 0x201   : > { %v4404_v33 = vpop.f32.mrf.mxu0  ;;  %4431 = vmatmul.mubr.msk.bf16.gmra.mxu1 %vm3078_vm8, %v3042_v32  ;;  %v2743_v32 = vadd.f32 %v5981_v24, %v2515_v53  ;;  %v2741_v10 = vadd.f32 %v5992_v42, %v2513_v22  ;;  %v6361_v24 = vld [vmem:[#allocation4_spill] sm:$0xff]  ;;  %v6363_v42 = vld [vmem:[#allocation3_spill] sm:$0xff]  ;;  %v6368_v22 = vld [vmem:[#allocation30_spill] sm:$0xff] }
 0x202   : > { %v3018_v1 = vmax.f32 %v2986_v30, 0.0  ;;  %v2984_v58 = vadd.f32 %v5971_v28, %v2945_v36  ;;  %v2950_v5 = vadd.f32 %v4404_v33, %v2738_v61  ;;  %v6359_v30 = vld [vmem:[#allocation7_spill] sm:$0xff]  ;;  %v6360_v36 = vld [vmem:[#allocation25_spill] sm:$0xff]  ;;  %v2519_v59 = vadd.f32 %v6361_v24, %v2313_v6  ;;  %v4383_v33 = vpop.f32.mrf.mxu1 }
 0x203   : > { %v2857_v57 = vpop.f32.mrf.mxu0  ;;  %v6373_v24 = vld [vmem:[#allocation9_spill] sm:$0xff] }
 0x204   : > { %v3044_v26 = vpack.c.bf16 %v3018_v1, %v3017_v37  ;;  %v3016_v0 = vmax.f32 %v2984_v58, 0.0  ;;  %v2948_v55 = vadd.f32 %v2857_v57, %v2736_v27  ;;  %v2989_v63 = vadd.f32 %v5971_v28, %v2950_v5  ;;  %v6362_v1 = vld [vmem:[#allocation2_spill] sm:$0xff] }
 0x205   : > { %v4405_v45 = vpop.f32.mrf.mxu0  ;;  %v2311_v27 = vadd.f32 %v6360_v36, %v6359_v30  ;;  %v2746_v58 = vadd.f32 %v6001_v23, %v6362_v1 }
 0x206   : > { %v3043_v12 = vpack.c.bf16 %v3016_v0, %v3015_v62  ;;  %v2951_v3 = vadd.f32 %v4405_v45, %v2739_v52  ;;  %v2987_v25 = vadd.f32 %v5971_v28, %v2948_v55  ;;  %v3021_v2 = vmax.f32 %v2989_v63, 0.0  ;;  %v2696_v63 = vpop.f32.mrf.mxu1 }
 0x207   : > { %v2860_v17 = vpop.f32.mrf.mxu0  ;;  %v2744_v62 = vadd.f32 %v6014_v19, %v6363_v42  ;;  %v6366_v19 = vld [vmem:[#allocation27_spill] sm:$0xff] }
 0x208   : > { %v2990_v50 = vadd.f32 %v5971_v28, %v2951_v3  ;;  %v2949_v8 = vadd.f32 %v2860_v17, %v2737_v56  ;;  %4434 = vmatprep.mubr.msk.bf16.mxu1 %vm3078_vm8, %v3043_v12  ;;  %v3019_v46 = vmax.f32 %v2987_v25, 0.0  ;;  %v2747_v12 = vadd.f32 %v6023_v4, %v2519_v59 }
 0x209   : > { %v4408_v7 = vpop.f32.mrf.mxu0  ;;  %4435 = vmatmul.mubr.msk.bf16.gmra.mxu1 %vm3078_vm8, %v3044_v26  ;;  %v6364_v26 = vld [vmem:[#allocation6_spill] sm:$0xff] }
 0x20a   : > { %v3022_v29 = vmax.f32 %v2990_v50, 0.0  ;;  %v2988_v20 = vadd.f32 %v5971_v28, %v2949_v8  ;;  %v2954_v48 = vadd.f32 %v4408_v7, %v2742_v14  ;;  %v2517_v0 = vadd.f32 %v6364_v26, %v2311_v27  ;;  %v6372_v27 = vld [vmem:[#allocation12_spill] sm:$0xff] }
 0x20b   : > { %v2873_v49 = vpop.f32.mrf.mxu0  ;;  %v2317_v14 = vadd.f32 %v6366_v19, %v6365_v31  ;;  %v2315_v7 = vadd.f32 %v6368_v22, %v6367_v54 }
 0x20c   : > { %v3046_v51 = vpack.c.bf16 %v3022_v29, %v3021_v2  ;;  %v3020_v9 = vmax.f32 %v2988_v20, 0.0  ;;  %v2952_v21 = vadd.f32 %v2873_v49, %v2740_v35  ;;  %v2993_v61 = vadd.f32 %v5971_v28, %v2954_v48  ;;  %v4386_v2 = vpop.f32.mrf.mxu1  ;;  %v6369_v20 = vld [vmem:[#allocation8_spill] sm:$0xff] }
 0x20d   : > { %v4409_v11 = vpop.f32.mrf.mxu0  ;;  %v2745_v50 = vadd.f32 %v6036_v43, %v2517_v0  ;;  %v2523_v4 = vadd.f32 %v5937_v40, %v2317_v14  ;;  %v2750_v48 = vadd.f32 %v4382_v38, %v6369_v20  ;;  %v6370_v43 = vld [vmem:[#allocation11_spill] sm:$0xff] }
 0x20e   : > { %v3045_v39 = vpack.c.bf16 %v3020_v9, %v3019_v46  ;;  %v2955_v41 = vadd.f32 %v4409_v11, %v2743_v32  ;;  %v2991_v5 = vadd.f32 %v5971_v28, %v2952_v21  ;;  %v3025_v16 = vmax.f32 %v2993_v61, 0.0  ;;  %v6371_v9 = vld [vmem:[#allocation13_spill] sm:$0xff] }
 0x20f   : > { %v2876_v37 = vpop.f32.mrf.mxu0  ;;  %v2521_v21 = vadd.f32 %v6371_v9, %v2315_v7  ;;  %v2751_v38 = vadd.f32 %v4383_v33, %v2523_v4 }
 0x210   : > { %v2994_v52 = vadd.f32 %v5971_v28, %v2955_v41  ;;  %v2953_v57 = vadd.f32 %v2876_v37, %v2741_v10  ;;  %4438 = vmatprep.mubr.msk.bf16.mxu1 %vm3078_vm8, %v3045_v39  ;;  %v3023_v18 = vmax.f32 %v2991_v5, 0.0  ;;  %v2709_v10 = vpop.f32.mrf.mxu1 }
 0x211   : > { %v4412_v55 = vpop.f32.mrf.mxu0  ;;  %4439 = vmatmul.mubr.msk.bf16.gmra.mxu1 %vm3078_vm8, %v3046_v51  ;;  %v2748_v51 = vadd.f32 %v2693_v13, %v6370_v43  ;;  %v2321_v13 = vadd.f32 %v6373_v24, %v6372_v27  ;;  %v2749_v37 = vadd.f32 %v2696_v63, %v2521_v21 }
 0x212   : > { %v3026_v45 = vmax.f32 %v2994_v52, 0.0  ;;  %v2992_v56 = vadd.f32 %v5971_v28, %v2953_v57  ;;  %v2958_v23 = vadd.f32 %v4412_v55, %v2746_v58  ;;  %v6374_v52 = vld [vmem:[#allocation14_spill] sm:$0xff]  ;;  %v4387_v26 = vpop.f32.mrf.mxu1  ;;  %v6377_v55 = vld [vmem:[#allocation17_spill] sm:$0xff] }
 0x213   : > { %v2889_v3 = vpop.f32.mrf.mxu0  ;;  %v6375_v57 = vld [vmem:[#allocation10_spill] sm:$0xff] }
 0x214   : > { %v3048_v44 = vpack.c.bf16 %v3026_v45, %v3025_v16  ;;  %v3024_v53 = vmax.f32 %v2992_v56, 0.0  ;;  %v2956_v17 = vadd.f32 %v2889_v3, %v2744_v62  ;;  %v2997_v47 = vadd.f32 %v5971_v28, %v2958_v23  ;;  %v6376_v62 = vld [vmem:[#allocation26_spill] sm:$0xff]  ;;  %v2712_v14 = vpop.f32.mrf.mxu1 }
 0x215   : > { %v4413_v25 = vpop.f32.mrf.mxu0  ;;  %v2319_v42 = vadd.f32 %v6375_v57, %v6374_v52  ;;  %v2527_v33 = vadd.f32 %v6376_v62, %v2321_v13  ;;  %v2754_v16 = vadd.f32 %v4386_v2, %v6377_v55 }
 0x216   : > { %v3047_v8 = vpack.c.bf16 %v3024_v53, %v3023_v18  ;;  %v2959_v35 = vadd.f32 %v4413_v25, %v2747_v12  ;;  %v2995_v32 = vadd.f32 %v5971_v28, %v2956_v17  ;;  %v3029_v15 = vmax.f32 %v2997_v47, 0.0  ;;  %v6378_v12 = vld [vmem:[#allocation21_spill] sm:$0xff] }
 0x217   : > { %v2892_v29 = vpop.f32.mrf.mxu0  ;;  %v2752_v63 = vadd.f32 %v2709_v10, %v6378_v12  ;;  %v2525_v3 = vadd.f32 %v5957_v34, %v2319_v42  ;;  %v2755_v19 = vadd.f32 %v4387_v26, %v2527_v33 }
 0x218   : > { %v2998_v49 = vadd.f32 %v5971_v28, %v2959_v35  ;;  %v2957_v46 = vadd.f32 %v2892_v29, %v2745_v50  ;;  %4442 = vmatprep.mubr.msk.bf16.mxu1 %vm3078_vm8, %v3047_v8  ;;  %v3027_v61 = vmax.f32 %v2995_v32, 0.0 }
 0x219   : > { %v4416_v60 = vpop.f32.mrf.mxu0  ;;  %4443 = vmatmul.mubr.msk.bf16.gmra.mxu1 %vm3078_vm8, %v3048_v44  ;;  %v2753_v22 = vadd.f32 %v2712_v14, %v2525_v3 }
 0x21a   : > { %v3030_v40 = vmax.f32 %v2998_v49, 0.0  ;;  %v2996_v6 = vadd.f32 %v5971_v28, %v2957_v46  ;;  %v2962_v11 = vadd.f32 %v4416_v60, %v2750_v48 }
 0x21b   : > { %v2905_v39 = vpop.f32.mrf.mxu0 }
 0x21c   : > { %v3050_v41 = vpack.c.bf16 %v3030_v40, %v3029_v15  ;;  %v3028_v30 = vmax.f32 %v2996_v6, 0.0  ;;  %v2960_v36 = vadd.f32 %v2905_v39, %v2748_v51  ;;  %v3001_v58 = vadd.f32 %v5971_v28, %v2962_v11  ;;  %v6114_v15 = vld [vmem:[%s6183_s4] ss:$0 sm:$0xff] }
 0x21d   : > { %v4417_v59 = vpop.f32.mrf.mxu0 }
 0x21e   : > { %v3049_v1 = vpack.c.bf16 %v3028_v30, %v3027_v61  ;;  %v2963_v5 = vadd.f32 %v4417_v59, %v2751_v38  ;;  %v2999_v45 = vadd.f32 %v5971_v28, %v2960_v36  ;;  %v3033_v44 = vmax.f32 %v3001_v58, 0.0 }
 0x21f   : > { %v2908_v0 = vpop.f32.mrf.mxu0 }
 0x220   : > { %v3002_v56 = vadd.f32 %v5971_v28, %v2963_v5  ;;  %v2961_v23 = vadd.f32 %v2908_v0, %v2749_v37  ;;  %4446 = vmatprep.mubr.msk.bf16.mxu1 %vm3078_vm8, %v3049_v1  ;;  %v3031_v50 = vmax.f32 %v2999_v45, 0.0 }
 0x221   : > { %v4420_v18 = vpop.f32.mrf.mxu0  ;;  %4447 = vmatmul.mubr.msk.bf16.gmra.mxu1 %vm3078_vm8, %v3050_v41 }
 0x222   : > { %v3034_v53 = vmax.f32 %v3002_v56, 0.0  ;;  %v3000_v17 = vadd.f32 %v5971_v28, %v2961_v23  ;;  %v2966_v31 = vadd.f32 %v4420_v18, %v2754_v16 }
 0x223   : > { %v2921_v25 = vpop.f32.mrf.mxu0 }
 0x224   : > { %v3052_v8 = vpack.c.bf16 %v3034_v53, %v3033_v44  ;;  %v3032_v47 = vmax.f32 %v3000_v17, 0.0  ;;  %v2964_v35 = vadd.f32 %v2921_v25, %v2752_v63  ;;  %v3005_v34 = vadd.f32 %v5971_v28, %v2966_v31 }
 0x225   : > { %v4421_v54 = vpop.f32.mrf.mxu0 }
 0x226   : > { %v3051_v7 = vpack.c.bf16 %v3032_v47, %v3031_v50  ;;  %v2967_v4 = vadd.f32 %v4421_v54, %v2755_v19  ;;  %v3003_v29 = vadd.f32 %v5971_v28, %v2964_v35  ;;  %v3037_v32 = vmax.f32 %v3005_v34, 0.0 }
 0x227   : > { %v2924_v2 = vpop.f32.mrf.mxu0 }
 0x228   : > { %v3006_v20 = vadd.f32 %v5971_v28, %v2967_v4  ;;  %v2965_v48 = vadd.f32 %v2924_v2, %v2753_v22  ;;  %4450 = vmatprep.mubr.msk.bf16.mxu1 %vm3078_vm8, %v3051_v7  ;;  %v3035_v43 = vmax.f32 %v3003_v29, 0.0 }
 0x229   : > { %4451 = vmatmul.mubr.msk.bf16.gmra.mxu1 %vm3078_vm8, %v3052_v8 }
 0x22a   : > { %v3038_v49 = vmax.f32 %v3006_v20, 0.0  ;;  %v3004_v46 = vadd.f32 %v5971_v28, %v2965_v48 }
 0x22c   : > { %v3054_v51 = vpack.c.bf16 %v3038_v49, %v3037_v32  ;;  %v3036_v9 = vmax.f32 %v3004_v46, 0.0 }
 0x22e   : > { %v3053_v21 = vpack.c.bf16 %v3036_v9, %v3035_v43 }
 0x230   : > { %4454 = vmatprep.mubr.msk.bf16.mxu1 %vm3078_vm8, %v3053_v21 }
 0x231   : > { %4455 = vmatmul.mubr.msk.bf16.gmra.mxu1 %vm3078_vm8, %v3054_v51 }
 0x2b9   : > { %v4428_v60 = vpop.f32.mrf.mxu1 }
 0x2ba   : > { %v3170_v11 = vadd.f32 %v4428_v60, %v6114_v15 }
 0x2bb   : > { %v3161_v40 = vpop.f32.mrf.mxu1 }
 0x2bc   : > { %v3162_v10 = vadd.f32 %v6114_v15, %v3161_v40 }
 0x2bd   : > { %v4429_v6 = vpop.f32.mrf.mxu1 }
 0x2be   : > { %v3173_v28 = vadd.f32 %v4429_v6, %v6114_v15 }
 0x2bf   : > { %v3164_v38 = vpop.f32.mrf.mxu1 }
 0x2c0   : > { %v3858_v39 = vpack.c.bf16 %v3173_v28, %v3170_v11  ;;  %v3165_v61 = vadd.f32 %v6114_v15, %v3164_v38 }
 0x2c1   : > { %v4432_v41 = vpop.f32.mrf.mxu1 }
 0x2c2   : > { %3930 = vst [vmem:[%s6122_s9 + $0x8] sm:$0xff] %v3858_v39   ;;  %v3853_v30 = vpack.c.bf16 %v3165_v61, %v3162_v10  ;;  %v3186_v24 = vadd.f32 %v4432_v41, %v6114_v15 }
 0x2c3   : > { %v3177_v36 = vpop.f32.mrf.mxu1 }
 0x2c4   : > { %3854 = vst [vmem:[%s6122_s9] sm:$0xff] %v3853_v30   ;;  %v3178_v37 = vadd.f32 %v6114_v15, %v3177_v36 }
 0x2c5   : > { %v4433_v27 = vpop.f32.mrf.mxu1 }
 0x2c6   : > { %v3189_v13 = vadd.f32 %v4433_v27, %v6114_v15 }
 0x2c7   : > { %v3180_v59 = vpop.f32.mrf.mxu1 }
 0x2c8   : > { %v3868_v1 = vpack.c.bf16 %v3189_v13, %v3186_v24  ;;  %v3181_v58 = vadd.f32 %v6114_v15, %v3180_v59 }
 0x2c9   : > { %v4436_v5 = vpop.f32.mrf.mxu1 }
 0x2ca   : > { %3932 = vst [vmem:[%s6122_s9 + $0x18] sm:$0xff] %v3868_v1   ;;  %v3863_v52 = vpack.c.bf16 %v3181_v58, %v3178_v37  ;;  %v3202_v62 = vadd.f32 %v4436_v5, %v6114_v15 }
 0x2cb   : > { %v3193_v57 = vpop.f32.mrf.mxu1 }
 0x2cc   : > { %3931 = vst [vmem:[%s6122_s9 + $0x10] sm:$0xff] %v3863_v52   ;;  %v3194_v0 = vadd.f32 %v6114_v15, %v3193_v57 }
 0x2cd   : > { %v4437_v42 = vpop.f32.mrf.mxu1 }
 0x2ce   : > { %v3205_v33 = vadd.f32 %v4437_v42, %v6114_v15 }
 0x2cf   : > { %v3196_v26 = vpop.f32.mrf.mxu1 }
 0x2d0   : > { %v3878_v55 = vpack.c.bf16 %v3205_v33, %v3202_v62  ;;  %v3197_v16 = vadd.f32 %v6114_v15, %v3196_v26 }
 0x2d1   : > { %v4440_v45 = vpop.f32.mrf.mxu1 }
 0x2d2   : > { %3934 = vst [vmem:[%s6122_s9 + $0x28] sm:$0xff] %v3878_v55   ;;  %v3873_v56 = vpack.c.bf16 %v3197_v16, %v3194_v0  ;;  %v3218_v63 = vadd.f32 %v4440_v45, %v6114_v15 }
 0x2d3   : > { %v3209_v23 = vpop.f32.mrf.mxu1 }
 0x2d4   : > { %3933 = vst [vmem:[%s6122_s9 + $0x20] sm:$0xff] %v3873_v56   ;;  %v3210_v44 = vadd.f32 %v6114_v15, %v3209_v23 }
 0x2d5   : > { %v4441_v12 = vpop.f32.mrf.mxu1 }
 0x2d6   : > { %v3221_v3 = vadd.f32 %v4441_v12, %v6114_v15 }
 0x2d7   : > { %v3212_v18 = vpop.f32.mrf.mxu1 }
 0x2d8   : > { %v3888_v53 = vpack.c.bf16 %v3221_v3, %v3218_v63  ;;  %v3213_v17 = vadd.f32 %v6114_v15, %v3212_v18 }
 0x2d9   : > { %v4444_v31 = vpop.f32.mrf.mxu1 }
 0x2da   : > { %3936 = vst [vmem:[%s6122_s9 + $0x38] sm:$0xff] %v3888_v53   ;;  %v3883_v19 = vpack.c.bf16 %v3213_v17, %v3210_v44  ;;  %v3234_v50 = vadd.f32 %v4444_v31, %v6114_v15 }
 0x2db   : > { %v3225_v14 = vpop.f32.mrf.mxu1 }
 0x2dc   : > { %3935 = vst [vmem:[%s6122_s9 + $0x30] sm:$0xff] %v3883_v19   ;;  %v3226_v35 = vadd.f32 %v6114_v15, %v3225_v14 }
 0x2dd   : > { %v4445_v25 = vpop.f32.mrf.mxu1 }
 0x2de   : > { %v3237_v8 = vadd.f32 %v4445_v25, %v6114_v15 }
 0x2df   : > { %v3228_v47 = vpop.f32.mrf.mxu1 }
 0x2e0   : > { %v3898_v54 = vpack.c.bf16 %v3237_v8, %v3234_v50  ;;  %v3229_v22 = vadd.f32 %v6114_v15, %v3228_v47 }
 0x2e1   : > { %v4448_v7 = vpop.f32.mrf.mxu1 }
 0x2e2   : > { %3938 = vst [vmem:[%s6122_s9 + $0x48] sm:$0xff] %v3898_v54   ;;  %v3893_v34 = vpack.c.bf16 %v3229_v22, %v3226_v35  ;;  %v3250_v29 = vadd.f32 %v4448_v7, %v6114_v15 }
 0x2e3   : > { %v3241_v4 = vpop.f32.mrf.mxu1 }
 0x2e4   : > { %3937 = vst [vmem:[%s6122_s9 + $0x40] sm:$0xff] %v3893_v34   ;;  %v3242_v32 = vadd.f32 %v6114_v15, %v3241_v4 }
 0x2e5   : > { %v4449_v2 = vpop.f32.mrf.mxu1 }
 0x2e6   : > { %v3253_v20 = vadd.f32 %v4449_v2, %v6114_v15 }
 0x2e7   : > { %v3244_v48 = vpop.f32.mrf.mxu1 }
 0x2e8   : > { %v3908_v49 = vpack.c.bf16 %v3253_v20, %v3250_v29  ;;  %v3245_v46 = vadd.f32 %v6114_v15, %v3244_v48 }
 0x2e9   : > { %v4452_v43 = vpop.f32.mrf.mxu1 }
 0x2ea   : > { %3940 = vst [vmem:[%s6122_s9 + $0x58] sm:$0xff] %v3908_v49   ;;  %v3903_v51 = vpack.c.bf16 %v3245_v46, %v3242_v32  ;;  %v3266_v60 = vadd.f32 %v4452_v43, %v6114_v15 }
 0x2eb   : > { %v3257_v9 = vpop.f32.mrf.mxu1 }
 0x2ec   : > { %3939 = vst [vmem:[%s6122_s9 + $0x50] sm:$0xff] %v3903_v51   ;;  %v3258_v11 = vadd.f32 %v6114_v15, %v3257_v9 }
 0x2ed   : > { %v4453_v21 = vpop.f32.mrf.mxu1 }
 0x2ee   : > { %v3269_v40 = vadd.f32 %v4453_v21, %v6114_v15 }
 0x2ef   : > { %v3260_v6 = vpop.f32.mrf.mxu1 }
 0x2f0   : > { %v3918_v28 = vpack.c.bf16 %v3269_v40, %v3266_v60  ;;  %v3261_v38 = vadd.f32 %v6114_v15, %v3260_v6 }
 0x2f1   : > { %v4456_v10 = vpop.f32.mrf.mxu1 }
 0x2f2   : > { %3942 = vst [vmem:[%s6122_s9 + $0x68] sm:$0xff] %v3918_v28   ;;  %v3913_v39 = vpack.c.bf16 %v3261_v38, %v3258_v11  ;;  %v3282_v30 = vadd.f32 %v4456_v10, %v6114_v15 }
 0x2f3   : > { %v3273_v61 = vpop.f32.mrf.mxu1 }
 0x2f4   : > { %3941 = vst [vmem:[%s6122_s9 + $0x60] sm:$0xff] %v3913_v39   ;;  %v3274_v24 = vadd.f32 %v6114_v15, %v3273_v61 }
 0x2f5   : > { %v4457_v41 = vpop.f32.mrf.mxu1 }
 0x2f6   : > { %v3285_v36 = vadd.f32 %v4457_v41, %v6114_v15 }
 0x2f7   : > { %v3276_v27 = vpop.f32.mrf.mxu1 }
 0x2f8   : > { %v3928_v13 = vpack.c.bf16 %v3285_v36, %v3282_v30  ;;  %v3277_v59 = vadd.f32 %v6114_v15, %v3276_v27 }
 0x2fa   : > { %3944 = vst [vmem:[%s6122_s9 + $0x78] sm:$0xff] %v3928_v13   ;;  %v3923_v37 = vpack.c.bf16 %v3277_v59, %v3274_v24 }
 0x2fc   : > { %3943 = vst [vmem:[%s6122_s9 + $0x70] sm:$0xff] %v3923_v37  }
 0x2fd PF: > { %s15_s20 = sadd.s32 1, %s4534_s20   ;;  %s6379_s18 = smov %s4530_s19 }
 0x2fe   : > { %p12_p5 = scmp.ge.s32.totalorder %s15_s20, 4   ;;  %s6380_s19 = smov %s6382_s21 }
 0x300   :  { %14 = sbr.rel (!%p12_p5) target bundleno = 2 (0x2), region = 79 }

</bundles_post_ra>
